<compile_context>
chip_gen: v7x
topology: tpu7x:2x2x1
jax: 0.10.0
libtpu: 0.0.40
codegen_flags: <defaults>
</compile_context>

<pallas_src>
import jax
import jax.numpy as jnp
from jax.experimental import pallas as pl
from jax.experimental.pallas import tpu as pltpu

_MIB = 1024 * 1024


def _pixel_shuffle_1d_kernel(x_ref, o_ref):
    # x_ref: (factor, Cb, Lb)    o_ref: (Cb, Lb*factor)
    factor, cb, lb = x_ref.shape
    x = x_ref[...]
    # lane interleave: y[ci, j*factor + f] = x[f, ci, j]
    o_ref[...] = jnp.transpose(x, (1, 2, 0)).reshape(cb, lb * factor)


def _choose_tiles(c, L, factor, itemsize, block_budget_bytes):
    """Pick (cb, lb) channel/L block sizes.

    Legal cb: multiple of 8, or == c.   Legal lb: multiple of 128, or == L.
    Aim: factor * cb * lb * itemsize <= block_budget_bytes (or the minimum
    legal tile if even that exceeds the budget).
    """
    plane_bytes = factor * itemsize
    min_cb = c if c < 8 else 8

    if L <= 128 or min_cb * L * plane_bytes <= block_budget_bytes:
        # Full-L blocks: fewest, most lane-dense DMAs.
        lb = L
        cb = max(1, block_budget_bytes // (L * plane_bytes))
        if cb >= c:
            cb = c
        else:
            cb = max(min_cb, (cb // 8) * 8)
    else:
        # Even one minimal channel row at full L exceeds the budget: tile L.
        cb = min_cb
        lb = max(1, block_budget_bytes // (cb * plane_bytes))
        if lb >= L:
            lb = L
        else:
            lb = max(128, (lb // 128) * 128)
    return cb, lb


def pixel_shuffle_1d(x, factor, *, target_block_bytes=8 * _MIB):
    """x: [b, factor*c, h, w] -> [b, c, h, w*factor] (PyTorch PixelShuffle1D)."""
    b, fc, h, w = x.shape
    assert fc % factor == 0
    c = fc // factor
    L = h * w
    L_out = L * factor
    itemsize = jnp.dtype(x.dtype).itemsize

    # Glue reshape (free): channel index fc_idx = f*c + ci -> axes (f, ci);
    # flatten (h, w) so the last dim is long and lane-dense.
    x4 = x.reshape(b, factor, c, L)

    # --- generation-aware VMEM budget ---------------------------------------
    try:
        vmem_cap = int(pltpu.get_tpu_info().vmem_capacity_bytes)
    except Exception:
        vmem_cap = 64 * _MIB                    # conservative: v7x physical VMEM
    vmem_soft_cap = (vmem_cap * 3) // 4         # headroom for Mosaic internals
    # Double-buffered in + out == 4x block_bytes; keep that comfortably inside
    # the soft cap (0.15 * cap), while still aiming for ~8 MiB blocks.
    block_budget = max(256 * 1024, min(target_block_bytes, (vmem_cap * 3) // 20))

    # --- tile sizes ----------------------------------------------------------
    cb, lb = _choose_tiles(c, L, factor, itemsize, block_budget)

    # v7x has 2 TensorCores: guarantee >=2 parallel grid steps when possible.
    if b * pl.cdiv(c, cb) * pl.cdiv(L, lb) < 2:
        if lb == L and L >= 256:
            lb = max(128, ((L // 2) // 128) * 128)
        elif cb == c and c >= 16:
            cb = max(8, ((c // 2) // 8) * 8)

    grid = (b, pl.cdiv(c, cb), pl.cdiv(L, lb))

    block_bytes = factor * cb * lb * itemsize   # in block == out block bytes
    vmem_limit = int(max(16 * _MIB, min(vmem_soft_cap, 6 * block_bytes + 4 * _MIB)))

    out_flat = pl.pallas_call(
        _pixel_shuffle_1d_kernel,
        out_shape=jax.ShapeDtypeStruct((b, c, L_out), x.dtype),
        grid=grid,
        in_specs=[
            pl.BlockSpec(
                (pl.Squeezed(), factor, cb, lb),
                lambda i, j, k: (i, 0, j, k),
            ),
        ],
        out_specs=pl.BlockSpec(
            (pl.Squeezed(), cb, lb * factor),
            lambda i, j, k: (i, j, k),
        ),
        compiler_params=pltpu.CompilerParams(
            dimension_semantics=("parallel", "parallel", "parallel"),
            vmem_limit_bytes=vmem_limit,
        ),
        cost_estimate=pl.CostEstimate(
            flops=0,
            transcendentals=0,
            bytes_accessed=2 * b * fc * h * w * itemsize,
        ),
    )(x4)

    # free reshape back to NCHW layout
    return out_flat.reshape(b, c, h, w * factor)


def _reference(x, factor):
    b, fc, h, w = x.shape
    c = fc // factor
    x5 = x.reshape(b, factor, c, h, w)
    y = jnp.transpose(x5, (0, 2, 3, 4, 1)).reshape(b, c, h, w * factor)
    return y


if __name__ == "__main__":
    key = jax.random.PRNGKey(0)
    b, factor, c, h, w = 2, 2, 4, 8, 16
    x = jax.random.normal(key, (b, factor * c, h, w), dtype=jnp.float32)

    y = pixel_shuffle_1d(x, factor)
    y = jax.block_until_ready(y)

    y_ref = _reference(x, factor)
    assert y.shape == (b, c, h, w * factor)
    assert jnp.array_equal(y, y_ref), "mismatch vs reference"
    print("KERNEL_OK")
</pallas_src>

<mosaic_0001>
module attributes {stable_mosaic.version = 11 : i64} {
  func.func @_pixel_shuffle_1d_kernel(%arg0: i32, %arg1: i32, %arg2: i32, %arg3: memref<1x2x4x128xf32, #tpu.memory_space<vmem>>, %arg4: memref<1x4x256xf32, #tpu.memory_space<vmem>>) attributes {dimension_semantics = [#tpu.dimension_semantics<parallel>, #tpu.dimension_semantics<parallel>, #tpu.dimension_semantics<parallel>], iteration_bounds = array<i64: 2, 1, 1>, scalar_prefetch = 0 : i64, scratch_operands = 0 : i64, tpu.core_type = #tpu.core_type<tc>, window_params = [{transform_indices = @transform_0, window_bounds = array<i64: 1, 2, 4, 128>}, {transform_indices = @transform_1, window_bounds = array<i64: 1, 4, 256>}]} {
    %c0 = arith.constant 0 : index
    %c0_0 = arith.constant 0 : index
    %c0_1 = arith.constant 0 : index
    %c0_2 = arith.constant 0 : index
    %0 = vector.load %arg3[%c0, %c0_0, %c0_1, %c0_2] : memref<1x2x4x128xf32, #tpu.memory_space<vmem>>, vector<1x2x4x128xf32>
    %1 = vector.shape_cast %0 : vector<1x2x4x128xf32> to vector<2x4x128xf32>
    %2 = tpu.transpose %1, [1, 2, 0] : vector<2x4x128xf32> -> vector<4x128x2xf32>
    %3 = vector.shape_cast %2 : vector<4x128x2xf32> to vector<4x256xf32>
    %c0_3 = arith.constant 0 : index
    %c0_4 = arith.constant 0 : index
    %c0_5 = arith.constant 0 : index
    %4 = vector.load %arg4[%c0_3, %c0_4, %c0_5] : memref<1x4x256xf32, #tpu.memory_space<vmem>>, vector<1x4x256xf32>
    %5 = vector.shape_cast %4 : vector<1x4x256xf32> to vector<4x256xf32>
    %6 = vector.shape_cast %3 : vector<4x256xf32> to vector<1x4x256xf32>
    tpu.vector_store %arg4[%c0_3, %c0_4, %c0_5], %6 {strides = array<i32>} : memref<1x4x256xf32, #tpu.memory_space<vmem>>, vector<1x4x256xf32>,
    return
  }
  func.func @transform_0(%arg0: i32, %arg1: i32, %arg2: i32) -> (i32, i32, i32, i32) {
    %c0_i32 = arith.constant 0 : i32
    %c0_i32_0 = arith.constant 0 : i32
    return %arg0, %c0_i32, %arg1, %arg2 : i32, i32, i32, i32
  }
  func.func @transform_1(%arg0: i32, %arg1: i32, %arg2: i32) -> (i32, i32, i32) {
    %c0_i32 = arith.constant 0 : i32
    return %arg0, %arg1, %arg2 : i32, i32, i32
  }
}

</mosaic_0001>

<bundles_post_ra>
// kernel: tpu_custom_call.1
= control target key start
LH: loop header
LB: loop body
LE: loop exit
PB: predicated region body
PF: predicated region fallthrough
CT: control target
= control target key end

     0   :  { %6 = vsyncpa [#allocation3], 0  ;;  %s10695_s0 = inlined_call_operand.hbm [shape: f32[2,2,4,128], index: 0, kind: input, shape index: {}]   ;;  %s10696_s1 = inlined_call_operand.hbm [shape: f32[2,4,256], index: 1, kind: output, shape index: {}]  }
   0x1   :  { %8 = vsyncpa [#allocation3 + $0x1], 0 }
   0x2   :  { %9 = vsyncpa [#allocation4], 0 }
   0x3   :  { %11 = vsyncpa [#allocation4 + $0x1], 0  ;;  %s8770_s6 = smov 0   ;;  %s8772_s7 = smov 0  }
   0x4   :  { %s8774_s8 = smov 0   ;;  %s8776_s9 = smov 0  }
   0x5   :  { %s8778_s10 = smov 0   ;;  %s8780_s11 = smov 0  }
   0x6 LB: > { %s8365_s12 = sadd.s32 4294967295, %s8688_s11   ;;  %s8366_s13 = sadd.s32 4294967294, %s8688_s11   ;;  %s8688_s11 = sphi %s8780_s11, %s17_s11   ;;  %s8684_s10 = sphi %s8778_s10, %s10943_s10   ;;  %s8680_s9 = sphi %s8776_s9, %s10942_s9   ;;  %s8676_s8 = sphi %s8774_s8, %s10941_s8   ;;  %s8672_s7 = sphi %s8772_s7, %s10940_s7   ;;  %s8668_s6 = sphi %s8770_s6, %s10939_s6  }
   0x7   : > { %s36_s14 = sadd.s32 1, %s8684_s10  ;;  %s47_s15 = sadd.s32 1, %s8676_s8 }
   0x8   : > { %p38_p0 = scmp.ge.s32.totalorder %s36_s14, 2  ;;  %p54_p1 = scmp.ne.s32.totalorder %s8676_s8, %s8672_s7 }
   0x9   : > { %p55_p2 = scmp.eq.s32.totalorder %s8688_s11, 0  ;;  %p60_p3 = scmp.ne.s32.totalorder %s8672_s7, %s8668_s6 }
   0xa   : > { %s10945_s14 = smov (%p38_p0, %s36_s14), 0  ;;  %p61_p5 = scmp.eq.s32.totalorder %s8365_s12, 0 }
   0xb   : > { %p8811_p4 = por %p55_p2, %p54_p1  ;;  %s40_s17 = ssub.s32 %s8684_s10, %s10945_s14 }
   0xc   : > { %p88_p6 = scmp.eq.s32.totalorder %s8365_s12, 1  ;;  %p45_p7 = scmp.eq.s32.totalorder %s40_s17, 0 }
   0xd   : > { %p8817_p8 = por %p61_p5, %p60_p3  ;;  %p94_p10 = scmp.eq.s32.totalorder %s8366_s13, 1 }
   0xe   : > { %p8821_p9 = por %p88_p6, %p54_p1  ;;  %p8458_p13 = scmp.lt.s32.totalorder %s8688_s11, 2 }
   0xf   : > { %s8826_s20 = scalar_select %p45_p7, %s8676_s8, %s47_s15  }
  0x10   : > { %s10786_s19 = scalar_select %p8821_p9, 1, 0 }
  0x11   : > { %p8828_p11 = por %p94_p10, %p60_p3  ;;  %s114_s22 = sand.u32 1, %s8676_s8  }
  0x12   : > { %s8369_s23 = sshll.u32 %s114_s22, 3  ;;  %s8444_s24 = sshll.u32 %s8684_s10, 7 }
  0x13   : > { %s10787_s21 = scalar_select %p8828_p11, 1, 0 }
  0x14   : > { %s8839_s27 = scalar_lea.hbm %s10695_s0, %s8444_s24  ;;  %s118_s28 = scalar_lea.vmem [#allocation2], %s8369_s23 }
  0x15   : > { %s127_s29 = sshll.u32 %s118_s28, 4  ;;  %p8845_p0 = pnand %p8458_p13, %p8811_p4  ;;  %s8841_s29 = int_to_ptr.vmem [resolvable:$true] %s127_s29 }
  0x16   : > { %s8850_s2 = scalar_lea.sflag [#allocation3], %s114_s22  ;;  %s8576_s3 = scalar_lea.hbm %s8839_s27, 128 }
  0x17   : > { %p8577_p2 = scmp.ne.s32.totalorder %s8839_s27, %s8576_s3  ;;  %p8578_p3 = pneg %p8845_p0 }
  0x18   : > { %s8581_s12 = scalar_lea.hbm %s10695_s0, 256  ;;  %p8582_p4 = scmp.lt.u32.totalorder %s8839_s27, %s10695_s0 }
  0x19   : > { %p8579_p5 = pnand %p8578_p3, %p8577_p2  ;;  %p8583_p7 = scmp.lt.u32.totalorder %s8581_s12, %s8576_s3 }
  0x1a   : > { %p8585_p13 = scmp.lt.u32.totalorder %s8576_s3, %s8839_s27 }
  0x1b   : > { %p8580_p6 = pneg %p8579_p5  ;;  %p8584_p10 = por %p8583_p7, %p8582_p4 }
  0x1d   : > { %p8586_p12 = por %p8585_p13, %p8584_p10 }
  0x1f   : > { %p8587_p1 = pnand %p8586_p12, %p8580_p6 }
  0x21   : > { %8590 = shalt.err (!%p8587_p1)
}
  0x22   : > { %s8591_s16 = scalar_lea.vmem %s8841_s29, 128  ;;  %s8690_s17 = smov [#allocation2]  }
  0x23   : > { %p8592_p2 = scmp.ne.s32.totalorder %s8841_s29, %s8591_s16  ;;  %s8596_s22 = sshll.u32 %s8690_s17, 4  ;;  %s8597_s22 = int_to_ptr.vmem [resolvable:$false] %s8596_s22 }
  0x24   : > { %s8598_s23 = scalar_lea.vmem %s8597_s22, 256  ;;  %p8599_p9 = scmp.lt.s32.totalorder %s8841_s29, %s8597_s22 }
  0x25   : > { %p8594_p5 = pnand %p8592_p2, %p8578_p3  ;;  %p8600_p4 = scmp.lt.s32.totalorder %s8598_s23, %s8591_s16 }
  0x27   : > { %p8595_p11 = pneg %p8594_p5  ;;  %p8601_p7 = por %p8600_p4, %p8599_p9 }
  0x29   : > { %p8602_p10 = pnand %p8601_p7, %p8595_p11 }
  0x2b   : > { %8605 = shalt.err (!%p8602_p10)
}
  0x2c   : > { %s8691_s24 = smov 64   ;;  %s8692_s25 = smov 4  }
  0x2d   : > { %8453 = dma.hbm_to_vmem [thread:$0]  (!%p8845_p0), %s8839_s27, 128, %s8841_s29, %s8850_s2, %s8691_s24, %s8691_s24, %s8692_s25  }
  0x2e   : > { %p135_p12 = scmp.lt.s32.totalorder %s8688_s11, 3  ;;  %p10789_p1 = scmp.ge.s32.totalorder %s8688_s11, 1 }
  0x30   : > { %p136_p3 = pnand %p10789_p1, %p135_p12 }
  0x32   : > { %139 = sbr.rel (%p136_p3) target bundleno = 991 (0x3df), region = 24 }
  0x39   : > { %s8882_s26 = sand.u32 1, %s8672_s7  }
  0x3a   : > { %s10702_s28 = sshll.u32 %s8882_s26, 3  ;;  %s142_s3 = scalar_lea.sflag [#allocation3], %s8882_s26 }
  0x3b   : > { %s145_s4 = scalar_lea.vmem [#allocation2], %s10702_s28 }
  0x3c   : > { %8659 = dma.done.wait (%p8817_p8), %s142_s3, 128  }
  0x3d   : > { %8661 = vsyncadd (%p8817_p8), %s142_s3, 4294967168  ;;  %v165_v0 = vld [vmem:[%s145_s4] sm:$0xf]  ;;  %v166_v1 = vld [vmem:[%s145_s4 + $0x4] sm:$0xf]  ;;  %v235_v18 = vlaneseq  ;;  %v10699_v37 = vmov 0.0  }
  0x3e   : > { %167 = vxpose.xlu0.b32.start.end [1/1] (short) %v165_v0, 128  ;;  %v8693_v16 = vmov 1983009808   ;;  %v8694_v22 = vmov 1934713408   ;;  %s8696_s18 = smov 4   ;;  %s8697_s27 = smov 14  }
  0x3f   : > { %v233_v17 = vunpack.c.l.s4 %v8693_v16  ;;  %v236_v21 = vshrl.u32 %v235_v18, 7  ;;  %v264_v23 = vunpack.c.l.s4 %v8694_v22  ;;  %s8698_s29 = smov 18   ;;  %s8699_s30 = smov 22   ;;  %vm8063_vm0 = vcmask 15360  }
  0x40   : > { %s8700_s2 = smov 26   ;;  %s8701_s5 = smov 30   ;;  %vm8065_vm1 = vcmask 31744   ;;  %vm8067_vm2 = vcmask 48128   ;;  %vm8069_vm3 = vcmask 64512   ;;  %vm8071_vm4 = vcmask 80896  }
  0x41   : > { %v234_v20 = vunpack.c.0.s8 %v233_v17  ;;  %v265_v26 = vunpack.c.0.s8 %v264_v23  ;;  %s8702_s12 = smov 34   ;;  %s8703_s13 = smov 38   ;;  %vm8073_vm5 = vcmask 97280   ;;  %vm8075_vm6 = vcmask 113664  }
  0x42   : > { %s8704_s15 = smov 42   ;;  %s8705_s16 = smov 46   ;;  %vm8077_vm7 = vcmask 130048   ;;  %vm8079_vm8 = vcmask 146432   ;;  %vm8081_vm9 = vcmask 162816   ;;  %vm8083_vm10 = vcmask 179200  }
  0x43   : > { %v8920_v25 = vsub.s32 %v234_v20, %v236_v21  ;;  %v8924_v30 = vsub.s32 %v265_v26, %v236_v21  ;;  %s10731_s17 = smov 50   ;;  %s10727_s22 = smov 54   ;;  %vm10739_vm11 = vcmask 195584   ;;  %vm10738_vm12 = vcmask 211968  }
  0x44   : > { %s10725_s23 = smov 58   ;;  %s10722_s24 = smov 62   ;;  %vm10741_vm13 = vcmask 228352   ;;  %vm10740_vm14 = vcmask 244736   ;;  %vm10743_vm15 = vcmask 261120  }
  0x45   : > { %s10721_s25 = smov 66   ;;  %s10716_s3 = smov 70  }
  0x46   : > { %s10714_s4 = smov 74   ;;  %s10704_s28 = smov 78  }
  0x47   : > { %p10936_p9 = scmp.ne.s32.totalorder %s10786_s19, 0 }
  0x7b   : > { %199 = vxpose.xlu0.b32.start.end [1/1] (short) %v166_v1, 128 }
  0xbe   : > { %v183_v2 = vpop.trf.xlu0 }
  0xbf   : > { %v238_v28 = vrot.slane %v183_v2, %v8920_v25  ;;  %v231_v41 = vcombine.high %v183_v2, %v10699_v37 }
  0xc1   : > { %v245_v48 = vrot.slane %v231_v41, %v8920_v25 }
  0xc2   : > { %v8892_v3 = vpop.trf.xlu0 }
  0xc3   : > { %v304_v26 = vrot.slane %v8892_v3, %v8920_v25 }
  0xc6   : > { %v8894_v4 = vpop.trf.xlu0 }
  0xc7   : > { %v8933_v36 = vrot.slane %v8894_v4, %v8920_v25 }
  0xca   : > { %v8896_v5 = vpop.trf.xlu0 }
  0xce   : > { %v187_v6 = vpop.trf.xlu0 }
  0xcf   : > { %v495_v49 = vcombine.high %v187_v6, %v10699_v37  ;;  %v502_v50 = vrot.slane %v187_v6, %v8920_v25 }
  0xd1   : > { %v509_v59 = vrot.slane %v495_v49, %v8920_v25 }
  0xd2   : > { %v8898_v7 = vpop.trf.xlu0 }
  0xd3   : > { %v568_v21 = vrot.slane %v8898_v7, %v8920_v25 }
  0xd6   : > { %v8900_v8 = vpop.trf.xlu0 }
  0xda   : > { %v8902_v9 = vpop.trf.xlu0 }
  0xde   : > { %v8904_v10 = vpop.trf.xlu0 }
  0xe2   : > { %v8906_v11 = vpop.trf.xlu0 }
  0xe6   : > { %v8908_v12 = vpop.trf.xlu0 }
  0xea   : > { %v8910_v13 = vpop.trf.xlu0 }
  0xee   : > { %v8912_v14 = vpop.trf.xlu0 }
  0xf2   : > { %v8914_v15 = vpop.trf.xlu0 }
  0xf6   : > { %v8916_v19 = vpop.trf.xlu0 }
  0xfa   : > { %v8918_v24 = vpop.trf.xlu0 }
  0xfe   : > { %v215_v27 = vpop.trf.xlu0 }
  0xff   : > { %v253_v29 = vrot.slane %v215_v27, %v8920_v25  ;;  %v246_v38 = vcombine.high %v215_v27, %v10699_v37 }
 0x101   : > { %v261_v31 = vcombine.low %v238_v28, %v253_v29  ;;  %v262_v34 = vcombine.high %v238_v28, %v253_v29  ;;  %v260_v46 = vrot.slane %v246_v38, %v8920_v25 }
 0x102   : > { %v8926_v32 = vpop.trf.xlu0 }
 0x103   : > { %v269_v33 = vrot.slane %v261_v31, %v8924_v30  ;;  %v276_v40 = vrot.slane %v262_v34, %v8924_v30  ;;  %v277_v55 = vcombine.low %v245_v48, %v260_v46  ;;  %v278_v62 = vcombine.high %v245_v48, %v260_v46 }
 0x104   : > { %v319_v22 = vrot.slane %v8926_v32, %v8920_v25 }
 0x105   : > { %1287 = vxpose.xlu1.b32.start.end [1/1] (short) (narrow) %v269_v33, 8  ;;  %v293_v44 = vcombine.high %v269_v33, %v10699_v37  ;;  %v294_v54 = vcombine.high %v276_v40, %v10699_v37  ;;  %v285_v60 = vrot.slane %v277_v55, %v8924_v30  ;;  %v292_v6 = vrot.slane %v278_v62, %v8924_v30 }
 0x106   : > { %v8929_v35 = vpop.trf.xlu0  ;;  %v561_v33 = vcombine.high %v8898_v7, %v10699_v37  ;;  %v327_v38 = vcombine.low %v304_v26, %v319_v22  ;;  %v328_v7 = vcombine.high %v304_v26, %v319_v22 }
 0x107   : > { %v8938_v39 = vrot.slane %v8929_v35, %v8920_v25  ;;  %v295_v23 = vcombine.high %v285_v60, %v10699_v37  ;;  %v296_v34 = vcombine.high %v292_v6, %v10699_v37 }
 0x108   : > { %v575_v46 = vrot.slane %v561_v33, %v8920_v25 }
 0x109   : > { %1351 = vxpose.xlu1.b32.start.end [1/1] (short) (narrow) %v276_v40, 8  ;;  %v393_v42 = vcombine.low %v8933_v36, %v8938_v39 }
 0x10a   : > { %v8944_v43 = vpop.trf.xlu0 }
 0x10b   : > { %v8948_v45 = vrot.slane %v393_v42, %v8924_v30 }
 0x10d   : > { %1319 = vxpose.xlu1.b32.start.end [1/1] (short) (narrow) %v293_v44, 8  ;;  %v425_v47 = vcombine.high %v8948_v45, %v10699_v37 }
 0x10e   : > { %v219_v51 = vpop.trf.xlu0 }
 0x10f   : > { %v510_v52 = vcombine.high %v219_v51, %v10699_v37  ;;  %v517_v53 = vrot.slane %v219_v51, %v8920_v25  ;;  %1831 = vxpose.xlu0.b32.start.end [1/1] (short) (narrow) %v425_v47, 8  ;;  %v335_v47 = vrot.slane %v327_v38, %v8924_v30 }
 0x111   : > { %v524_v56 = vrot.slane %v510_v52, %v8920_v25  ;;  %1383 = vxpose.xlu1.b32.start.end [1/1] (short) (narrow) %v294_v54, 8  ;;  %v525_v57 = vcombine.low %v502_v50, %v517_v53  ;;  %v526_v58 = vcombine.high %v502_v50, %v517_v53  ;;  %v312_v52 = vcombine.high %v8926_v32, %v10699_v37 }
 0x112   : > { %v220_v2 = vpop.trf.xlu0  ;;  %v342_v53 = vrot.slane %v328_v7, %v8924_v30  ;;  %v297_v54 = vcombine.high %v8892_v3, %v10699_v37  ;;  %v359_v32 = vcombine.high %v335_v47, %v10699_v37 }
 0x113   : > { %v8963_v61 = vrot.slane %v525_v57, %v8924_v30  ;;  %v8968_v0 = vrot.slane %v526_v58, %v8924_v30  ;;  %v541_v1 = vcombine.low %v509_v59, %v524_v56  ;;  %v583_v16 = vrot.slane %v220_v2, %v8920_v25 }
 0x114   : > { %v542_v20 = vcombine.high %v509_v59, %v524_v56  ;;  %v576_v27 = vcombine.high %v220_v2, %v10699_v37  ;;  %v634_v59 = vrot.slane %v8900_v8, %v8920_v25  ;;  %v311_v3 = vrot.slane %v297_v54, %v8920_v25 }
 0x115   : > { %1415 = vxpose.xlu1.b32.start.end [1/1] (short) (narrow) %v285_v60, 8  ;;  %v557_v63 = vcombine.high %v8963_v61, %v10699_v37  ;;  %v558_v17 = vcombine.high %v8968_v0, %v10699_v37  ;;  %v8975_v18 = vrot.slane %v541_v1, %v8924_v30  ;;  %v591_v31 = vcombine.low %v568_v21, %v583_v16 }
 0x116   : > { %v8988_v29 = vrot.slane %v542_v20, %v8924_v30  ;;  %v590_v40 = vrot.slane %v576_v27, %v8920_v25  ;;  %v592_v44 = vcombine.high %v568_v21, %v583_v16  ;;  %v221_v51 = vpop.trf.xlu0  ;;  %v326_v60 = vrot.slane %v312_v52, %v8920_v25 }
 0x117   : > { %2343 = vxpose.xlu0.b32.start.end [1/1] (short) (narrow) %v557_v63, 8  ;;  %v559_v28 = vcombine.high %v8975_v18, %v10699_v37  ;;  %v8997_v42 = vrot.slane %v591_v31, %v8924_v30  ;;  %v649_v55 = vrot.slane %v221_v51, %v8920_v25  ;;  %v642_v62 = vcombine.high %v221_v51, %v10699_v37 }
 0x118   : > { %v560_v41 = vcombine.high %v8988_v29, %v10699_v37  ;;  %v9004_v49 = vrot.slane %v592_v44, %v8924_v30  ;;  %v607_v50 = vcombine.low %v575_v46, %v590_v40  ;;  %v608_v58 = vcombine.high %v575_v46, %v590_v40 }
 0x119   : > { %1479 = vxpose.xlu1.b32.start.end [1/1] (short) (narrow) %v292_v6, 8  ;;  %v623_v48 = vcombine.high %v8997_v42, %v10699_v37  ;;  %v657_v2 = vcombine.low %v634_v59, %v649_v55  ;;  %v627_v6 = vcombine.high %v8900_v8, %v10699_v37  ;;  %v360_v16 = vcombine.high %v342_v53, %v10699_v37 }
 0x11a   : > { %v624_v56 = vcombine.high %v9004_v49, %v10699_v37  ;;  %v9015_v57 = vrot.slane %v607_v50, %v8924_v30  ;;  %v9026_v1 = vrot.slane %v608_v58, %v8924_v30  ;;  %v656_v20 = vrot.slane %v642_v62, %v8920_v25 }
 0x11b   : > { %2407 = vxpose.xlu0.b32.start.end [1/1] (short) (narrow) %v558_v17, 8  ;;  %v343_v17 = vcombine.low %v311_v3, %v326_v60  ;;  %v9035_v22 = vrot.slane %v657_v2, %v8924_v30  ;;  %v641_v26 = vrot.slane %v627_v6, %v8920_v25  ;;  %v344_v8 = vcombine.high %v311_v3, %v326_v60 }
 0x11c   : > { %v625_v63 = vcombine.high %v9015_v57, %v10699_v37  ;;  %v626_v21 = vcombine.high %v9026_v1, %v10699_v37  ;;  %v378_v60 = vcombine.high %v8929_v35, %v10699_v37  ;;  %v363_v3 = vcombine.high %v8894_v4, %v10699_v37 }
 0x11d   : > { %1447 = vxpose.xlu1.b32.start.end [1/1] (short) (narrow) %v295_v23, 8  ;;  %v658_v23 = vcombine.high %v634_v59, %v649_v55  ;;  %v351_v27 = vrot.slane %v343_v17, %v8924_v30  ;;  %v673_v33 = vcombine.low %v641_v26, %v656_v20  ;;  %v358_v38 = vrot.slane %v344_v8, %v8924_v30 }
 0x11e   : > { %v674_v46 = vcombine.high %v641_v26, %v656_v20  ;;  %v766_v20 = vrot.slane %v8904_v10, %v8920_v25 }
 0x11f   : > { %2471 = vxpose.xlu0.b32.start.end [1/1] (short) (narrow) %v559_v28, 8  ;;  %v689_v28 = vcombine.high %v9035_v22, %v10699_v37  ;;  %v9042_v31 = vrot.slane %v658_v23, %v8924_v30  ;;  %v9049_v44 = vrot.slane %v673_v33, %v8924_v30  ;;  %v361_v7 = vcombine.high %v351_v27, %v10699_v37 }
 0x120   : > { %v9058_v51 = vrot.slane %v674_v46, %v8924_v30  ;;  %v362_v54 = vcombine.high %v358_v38, %v10699_v37  ;;  %v759_v33 = vcombine.high %v8904_v10, %v10699_v37 }
 0x121   : > { %1511 = vxpose.xlu1.b32.start.end [1/1] (short) (narrow) %v296_v34, 8  ;;  %v222_v34 = vpop.trf.xlu0  ;;  %v691_v50 = vcombine.high %v9049_v44, %v10699_v37 }
 0x122   : > { %v715_v40 = vrot.slane %v222_v34, %v8920_v25 }
 0x123   : > { %2535 = vxpose.xlu0.b32.start.end [1/1] (short) (narrow) %v560_v41, 8  ;;  %v690_v41 = vcombine.high %v9042_v31, %v10699_v37 }
 0x125   : > { %1543 = vxpose.xlu1.b32.start.end [1/1] (short) (narrow) %v335_v47, 8  ;;  %v700_v47 = vrot.slane %v8902_v9, %v8920_v25  ;;  %v223_v6 = vpop.trf.xlu0 }
 0x126   : > { %v774_v26 = vcombine.high %v223_v6, %v10699_v37 }
 0x127   : > { %2599 = vxpose.xlu0.b32.start.end [1/1] (short) (narrow) %v623_v48, 8  ;;  %v708_v48 = vcombine.high %v222_v34, %v10699_v37  ;;  %v723_v52 = vcombine.low %v700_v47, %v715_v40  ;;  %v724_v59 = vcombine.high %v700_v47, %v715_v40 }
 0x128   : > { %v788_v40 = vrot.slane %v774_v26, %v8920_v25 }
 0x129   : > { %1607 = vxpose.xlu1.b32.start.end [1/1] (short) (narrow) %v342_v53, 8  ;;  %v693_v53 = vcombine.high %v8902_v9, %v10699_v37  ;;  %v722_v55 = vrot.slane %v708_v48, %v8920_v25  ;;  %v9067_v58 = vrot.slane %v723_v52, %v8924_v30  ;;  %v394_v9 = vcombine.high %v8933_v36, %v8938_v39 }
 0x12a   : > { %v377_v36 = vrot.slane %v363_v3, %v8920_v25  ;;  %v781_v39 = vrot.slane %v223_v6, %v8920_v25  ;;  %v832_v3 = vrot.slane %v8906_v11, %v8920_v25 }
 0x12b   : > { %2663 = vxpose.xlu0.b32.start.end [1/1] (short) (narrow) %v624_v56, 8  ;;  %v692_v56 = vcombine.high %v9058_v51, %v10699_v37  ;;  %v755_v62 = vcombine.high %v9067_v58, %v10699_v37  ;;  %v408_v35 = vrot.slane %v394_v9, %v8924_v30 }
 0x12d   : > { %1575 = vxpose.xlu1.b32.start.end [1/1] (short) (narrow) %v359_v32, 8  ;;  %v707_v32 = vrot.slane %v693_v53, %v8920_v25  ;;  %v224_v53 = vpop.trf.xlu0 }
 0x12e   : > { %v840_v6 = vcombine.high %v224_v53, %v10699_v37 }
 0x12f   : > { %2727 = vxpose.xlu0.b32.start.end [1/1] (short) (narrow) %v625_v63, 8  ;;  %v9080_v63 = vrot.slane %v724_v59, %v8924_v30  ;;  %v739_v2 = vcombine.low %v707_v32, %v722_v55  ;;  %v740_v17 = vcombine.high %v707_v32, %v722_v55  ;;  %v847_v32 = vrot.slane %v224_v53, %v8920_v25 }
 0x130   : > { %v898_v53 = vrot.slane %v8908_v12, %v8920_v25 }
 0x131   : > { %1639 = vxpose.xlu1.b32.start.end [1/1] (short) (narrow) %v360_v16, 8  ;;  %v392_v16 = vrot.slane %v378_v60, %v8920_v25  ;;  %v756_v4 = vcombine.high %v9080_v63, %v10699_v37 }
 0x133   : > { %2791 = vxpose.xlu0.b32.start.end [1/1] (short) (narrow) %v626_v21, 8  ;;  %v426_v21 = vcombine.high %v408_v35, %v10699_v37  ;;  %v409_v23 = vcombine.low %v377_v36, %v392_v16 }
 0x135   : > { %1671 = vxpose.xlu1.b32.start.end [1/1] (short) (narrow) %v351_v27, 8  ;;  %v789_v27 = vcombine.low %v766_v20, %v781_v39  ;;  %v417_v34 = vrot.slane %v409_v23, %v8924_v30 }
 0x137   : > { %2855 = vxpose.xlu0.b32.start.end [1/1] (short) (narrow) %v689_v28, 8  ;;  %v9098_v28 = vrot.slane %v740_v17, %v8924_v30  ;;  %v9107_v47 = vrot.slane %v789_v27, %v8924_v30  ;;  %v427_v55 = vcombine.high %v417_v34, %v10699_v37  ;;  %v854_v17 = vrot.slane %v840_v6, %v8920_v25 }
 0x138   : > { %v444_v27 = vcombine.high %v8944_v43, %v10699_v37 }
 0x139   : > { %1735 = vxpose.xlu1.b32.start.end [1/1] (short) (narrow) %v358_v38, 8  ;;  %v410_v38 = vcombine.high %v377_v36, %v392_v16  ;;  %v758_v46 = vcombine.high %v9098_v28, %v10699_v37 }
 0x13b   : > { %2919 = vxpose.xlu0.b32.start.end [1/1] (short) (narrow) %v690_v41, 8  ;;  %v790_v41 = vcombine.high %v766_v20, %v781_v39  ;;  %v424_v48 = vrot.slane %v410_v38, %v8924_v30  ;;  %v825_v39 = vcombine.high %v8906_v11, %v10699_v37  ;;  %v856_v20 = vcombine.high %v832_v3, %v847_v32 }
 0x13d   : > { %1703 = vxpose.xlu1.b32.start.end [1/1] (short) (narrow) %v361_v7, 8  ;;  %v773_v7 = vrot.slane %v759_v33, %v8920_v25  ;;  %v9114_v52 = vrot.slane %v790_v41, %v8924_v30  ;;  %v839_v26 = vrot.slane %v825_v39, %v8920_v25  ;;  %v429_v33 = vcombine.high %v8896_v5, %v10699_v37  ;;  %v225_v41 = vpop.trf.xlu0 }
 0x13f   : > { %2983 = vxpose.xlu0.b32.start.end [1/1] (short) (narrow) %v691_v50, 8  ;;  %v805_v10 = vcombine.low %v773_v7, %v788_v40  ;;  %v821_v50 = vcombine.high %v9107_v47, %v10699_v37  ;;  %v806_v59 = vcombine.high %v773_v7, %v788_v40  ;;  %v822_v60 = vcombine.high %v9114_v52, %v10699_v37 }
 0x140   : > { %v9154_v40 = vrot.slane %v856_v20, %v8924_v30  ;;  %v443_v7 = vrot.slane %v429_v33, %v8920_v25 }
 0x141   : > { %1767 = vxpose.xlu1.b32.start.end [1/1] (short) (narrow) %v362_v54, 8  ;;  %v451_v54 = vrot.slane %v8944_v43, %v8920_v25  ;;  %v9125_v9 = vrot.slane %v805_v10, %v8924_v30  ;;  %v9134_v36 = vrot.slane %v806_v59, %v8924_v30  ;;  %v458_v43 = vrot.slane %v444_v27, %v8920_v25  ;;  %v226_v20 = vpop.trf.xlu0 }
 0x142   : > { %v913_v10 = vrot.slane %v225_v41, %v8920_v25 }
 0x143   : > { %3047 = vxpose.xlu0.b32.start.end [1/1] (short) (narrow) %v692_v56, 8  ;;  %v436_v56 = vrot.slane %v8896_v5, %v8920_v25  ;;  %v823_v16 = vcombine.high %v9125_v9, %v10699_v37  ;;  %v888_v5 = vcombine.high %v9154_v40, %v10699_v37 }
 0x144   : > { %v921_v59 = vcombine.low %v898_v53, %v913_v10  ;;  %v922_v6 = vcombine.high %v898_v53, %v913_v10 }
 0x145   : > { %1799 = vxpose.xlu1.b32.start.end [1/1] (short) (narrow) %v8948_v45, 8  ;;  %v9089_v45 = vrot.slane %v739_v2, %v8924_v30  ;;  %v459_v2 = vcombine.low %v436_v56, %v451_v54 }
 0x147   : > { %3111 = vxpose.xlu0.b32.start.end [1/1] (short) (narrow) %v755_v62, 8  ;;  %v757_v8 = vcombine.high %v9089_v45, %v10699_v37  ;;  %v428_v62 = vcombine.high %v424_v48, %v10699_v37 }
 0x149   : > { %1863 = vxpose.xlu1.b32.start.end [1/1] (short) (narrow) %v408_v35, 8  ;;  %v855_v35 = vcombine.low %v832_v3, %v847_v32  ;;  %v891_v3 = vcombine.high %v8908_v12, %v10699_v37 }
 0x14b   : > { %3175 = vxpose.xlu0.b32.start.end [1/1] (short) (narrow) %v756_v4, 8  ;;  %v467_v4 = vrot.slane %v459_v2, %v8924_v30  ;;  %v9143_v23 = vrot.slane %v855_v35, %v8924_v30  ;;  %v905_v39 = vrot.slane %v891_v3, %v8920_v25 }
 0x14d   : > { %1895 = vxpose.xlu1.b32.start.end [1/1] (short) (narrow) %v426_v21, 8  ;;  %v824_v21 = vcombine.high %v9134_v36, %v10699_v37  ;;  %v491_v11 = vcombine.high %v467_v4, %v10699_v37  ;;  %v887_v38 = vcombine.high %v9143_v23, %v10699_v37 }
 0x14f   : > { %3239 = vxpose.xlu0.b32.start.end [1/1] (short) (narrow) %v757_v8, 8  ;;  %v460_v8 = vcombine.high %v436_v56, %v451_v54  ;;  %v906_v56 = vcombine.high %v225_v41, %v10699_v37  ;;  %v227_v41 = vpop.trf.xlu0 }
 0x151   : > { %1927 = vxpose.xlu1.b32.start.end [1/1] (short) (narrow) %v417_v34, 8  ;;  %v871_v34 = vcombine.low %v839_v26, %v854_v17  ;;  %v920_v2 = vrot.slane %v906_v56, %v8920_v25 }
 0x153   : > { %3303 = vxpose.xlu0.b32.start.end [1/1] (short) (narrow) %v758_v46, 8  ;;  %v474_v46 = vrot.slane %v460_v8, %v8924_v30  ;;  %v937_v12 = vcombine.low %v905_v39, %v920_v2  ;;  %v979_v8 = vrot.slane %v226_v20, %v8920_v25 }
 0x155   : > { %1991 = vxpose.xlu1.b32.start.end [1/1] (short) (narrow) %v424_v48, 8  ;;  %v872_v48 = vcombine.high %v839_v26, %v854_v17  ;;  %v492_v54 = vcombine.high %v474_v46, %v10699_v37  ;;  %v476_v17 = vcombine.high %v443_v7, %v458_v43  ;;  %v9188_v26 = vrot.slane %v922_v6, %v8924_v30 }
 0x157   : > { %3367 = vxpose.xlu0.b32.start.end [1/1] (short) (narrow) %v821_v50, 8  ;;  %v9163_v50 = vrot.slane %v871_v34, %v8924_v30  ;;  %v490_v27 = vrot.slane %v476_v17, %v8924_v30  ;;  %v954_v33 = vcombine.high %v9188_v26, %v10699_v37  ;;  %v9195_v34 = vrot.slane %v937_v12, %v8924_v30 }
 0x158   : > { %v1030_v17 = vrot.slane %v8912_v14, %v8920_v25  ;;  %v1038_v12 = vcombine.high %v227_v41, %v10699_v37 }
 0x159   : > { %1959 = vxpose.xlu1.b32.start.end [1/1] (short) (narrow) %v427_v55, 8  ;;  %v475_v55 = vcombine.low %v443_v7, %v458_v43  ;;  %v889_v32 = vcombine.high %v9163_v50, %v10699_v37  ;;  %v972_v43 = vcombine.high %v226_v20, %v10699_v37 }
 0x15b   : > { %3431 = vxpose.xlu0.b32.start.end [1/1] (short) (narrow) %v822_v60, 8  ;;  %v9172_v60 = vrot.slane %v872_v48, %v8924_v30  ;;  %v955_v48 = vcombine.high %v9195_v34, %v10699_v37  ;;  %v986_v53 = vrot.slane %v972_v43, %v8920_v25 }
 0x15d   : > { %2023 = vxpose.xlu1.b32.start.end [1/1] (short) (narrow) %v428_v62, 8  ;;  %v483_v62 = vrot.slane %v475_v55, %v8924_v30  ;;  %v890_v35 = vcombine.high %v9172_v60, %v10699_v37  ;;  %v9209_v55 = vpop.trf.xlu0 }
 0x15f   : > { %3495 = vxpose.xlu0.b32.start.end [1/1] (short) (narrow) %v823_v16, 8  ;;  %v9181_v16 = vrot.slane %v921_v59, %v8924_v30 }
 0x161   : > { %2055 = vxpose.xlu1.b32.start.end [1/1] (short) (narrow) %v467_v4, 8  ;;  %v493_v4 = vcombine.high %v483_v62, %v10699_v37 }
 0x163   : > { %3559 = vxpose.xlu0.b32.start.end [1/1] (short) (narrow) %v824_v21, 8  ;;  %v953_v21 = vcombine.high %v9181_v16, %v10699_v37 }
 0x165   : > { %2087 = vxpose.xlu1.b32.start.end [1/1] (short) (narrow) %v491_v11, 8  ;;  %v938_v11 = vcombine.high %v905_v39, %v920_v2 }
 0x167   : > { %3623 = vxpose.xlu0.b32.start.end [1/1] (short) (narrow) %v887_v38, 8  ;;  %v964_v38 = vrot.slane %v8910_v13, %v8920_v25  ;;  %v9204_v10 = vrot.slane %v938_v11, %v8924_v30 }
 0x169   : > { %2119 = vxpose.xlu1.b32.start.end [1/1] (short) (narrow) %v474_v46, 8  ;;  %v494_v46 = vcombine.high %v490_v27, %v10699_v37  ;;  %v987_v7 = vcombine.low %v964_v38, %v979_v8  ;;  %v956_v56 = vcombine.high %v9204_v10, %v10699_v37 }
 0x16b   : > { %3687 = vxpose.xlu0.b32.start.end [1/1] (short) (narrow) %v888_v5, 8  ;;  %v957_v5 = vcombine.high %v8910_v13, %v10699_v37  ;;  %v9215_v59 = vrot.slane %v987_v7, %v8924_v30 }
 0x16d   : > { %2151 = vxpose.xlu1.b32.start.end [1/1] (short) (narrow) %v492_v54, 8  ;;  %v988_v54 = vcombine.high %v964_v38, %v979_v8  ;;  %v1019_v13 = vcombine.high %v9215_v59, %v10699_v37  ;;  %v1052_v38 = vrot.slane %v1038_v12, %v8920_v25 }
 0x16f   : > { %3751 = vxpose.xlu0.b32.start.end [1/1] (short) (narrow) %v889_v32, 8  ;;  %v971_v32 = vrot.slane %v957_v5, %v8920_v25  ;;  %v9222_v2 = vrot.slane %v988_v54, %v8924_v30 }
 0x171   : > { %2183 = vxpose.xlu1.b32.start.end [1/1] (short) (narrow) %v483_v62, 8  ;;  %v1003_v3 = vcombine.low %v971_v32, %v986_v53  ;;  %v1004_v6 = vcombine.high %v971_v32, %v986_v53 }
 0x173   : > { %3815 = vxpose.xlu0.b32.start.end [1/1] (short) (narrow) %v890_v35, 8  ;;  %v1045_v35 = vrot.slane %v227_v41, %v8920_v25  ;;  %v9242_v11 = vrot.slane %v1004_v6, %v8924_v30 }
 0x175   : > { %2215 = vxpose.xlu1.b32.start.end [1/1] (short) (narrow) %v493_v4, 8  ;;  %v1020_v4 = vcombine.high %v9222_v2, %v10699_v37  ;;  %v1053_v20 = vcombine.low %v1030_v17, %v1045_v35  ;;  %v1054_v41 = vcombine.high %v1030_v17, %v1045_v35 }
 0x177   : > { %3879 = vxpose.xlu0.b32.start.end [1/1] (short) (narrow) %v953_v21, 8  ;;  %v9251_v43 = vrot.slane %v1053_v20, %v8924_v30  ;;  %v9262_v32 = vrot.slane %v1054_v41, %v8924_v30 }
 0x179   : > { %2247 = vxpose.xlu1.b32.start.end [1/1] (short) (narrow) %v490_v27, 8  ;;  %v1086_v17 = vcombine.high %v9262_v32, %v10699_v37 }
 0x17b   : > { %3943 = vxpose.xlu0.b32.start.end [1/1] (short) (narrow) %v954_v33, 8  ;;  %v1023_v33 = vcombine.high %v8912_v14, %v10699_v37 }
 0x17d   : > { %2279 = vxpose.xlu1.b32.start.end [1/1] (short) (narrow) %v494_v46, 8  ;;  %v1037_v14 = vrot.slane %v1023_v33, %v8920_v25 }
 0x17f   : > { %4007 = vxpose.xlu0.b32.start.end [1/1] (short) (narrow) %v955_v48, 8  ;;  %v1069_v54 = vcombine.low %v1037_v14, %v1052_v38 }
 0x181   : > { %2311 = vxpose.xlu1.b32.start.end [1/1] (short) (narrow) %v8963_v61, 8  ;;  %v9224_v61 = vpop.trf.xlu0  ;;  %v9274_v12 = vrot.slane %v1069_v54, %v8924_v30 }
 0x183   : > { %4071 = vxpose.xlu0.b32.start.end [1/1] (short) (narrow) %v956_v56, 8 }
 0x185   : > { %v1303_v62 = vpop.trf.xlu1  ;;  %2375 = vxpose.xlu1.b32.start.end [1/1] (short) (narrow) %v8968_v0, 8  ;;  %v9231_v0 = vrot.slane %v1003_v3, %v8924_v30  ;;  %v9236_v21 = vpop.trf.xlu0 }
 0x187   : > { %4135 = vxpose.xlu0.b32.start.end [1/1] (short) (narrow) %v1019_v13, 8 }
 0x189   : > { %v1367_v39 = vpop.trf.xlu1  ;;  %2439 = vxpose.xlu1.b32.start.end [1/1] (short) (narrow) %v8975_v18, 8  ;;  %v1021_v18 = vcombine.high %v9231_v0, %v10699_v37 }
 0x18a   : > { %v5383_v8 = vcombine.low %v1303_v62, %v1367_v39  ;;  %v1070_v39 = vcombine.high %v1037_v14, %v1052_v38  ;;  %v1221_v14 = vcombine.high %v8918_v24, %v10699_v37 }
 0x18b   : > { %4199 = vxpose.xlu0.b32.start.end [1/1] (short) (narrow) %v1020_v4, 8  ;;  %v1111_v4 = vrot.slane %v9209_v55, %v8920_v25 }
 0x18c   : > { %v5390_v48 = vrot.slane %v5383_v8, %v8920_v25 }
 0x18d   : > { %v1335_v27 = vpop.trf.xlu1  ;;  %2503 = vxpose.xlu1.b32.start.end [1/1] (short) (narrow) %v8988_v29, 8  ;;  %v1022_v29 = vcombine.high %v9242_v11, %v10699_v37 }
 0x18f   : > { %4263 = vxpose.xlu0.b32.start.end [1/1] (short) (narrow) %v1021_v18, 8  ;;  %v9253_v7 = vpop.trf.xlu0  ;;  %v1096_v18 = vrot.slane %v8914_v15, %v8920_v25 }
 0x191   : > { %v1399_v46 = vpop.trf.xlu1  ;;  %2567 = vxpose.xlu1.b32.start.end [1/1] (short) (narrow) %v8997_v42, 8  ;;  %v1085_v42 = vcombine.high %v9251_v43, %v10699_v37  ;;  %v1119_v41 = vcombine.low %v1096_v18, %v1111_v4 }
 0x192   : > { %v5391_v5 = vcombine.low %v1335_v27, %v1399_v46 }
 0x193   : > { %4327 = vxpose.xlu0.b32.start.end [1/1] (short) (narrow) %v1022_v29, 8  ;;  %v1087_v29 = vcombine.high %v9274_v12, %v10699_v37 }
 0x194   : > { %v5398_v53 = vrot.slane %v5391_v5, %v8920_v25 }
 0x195   : > { %v1431_v56 = vpop.trf.xlu1  ;;  %2631 = vxpose.xlu1.b32.start.end [1/1] (short) (narrow) %v9004_v49, 8 }
 0x196   : > { %v5415_v3 = vcombine.low %v5390_v48, %v5398_v53  ;;  %v5416_v62 = vcombine.high %v5390_v48, %v5398_v53  ;;  %v9292_v48 = vrot.slane %v1070_v39, %v8924_v30 }
 0x197   : > { %4391 = vxpose.xlu0.b32.start.end [1/1] (short) (narrow) %v1085_v42, 8  ;;  %v9264_v13 = vpop.trf.xlu0  ;;  %v1120_v42 = vcombine.high %v1096_v18, %v1111_v4 }
 0x198   : > { %v5423_v6 = vrot.slane %v5415_v3, %v8924_v30  ;;  %v5430_v35 = vrot.slane %v5416_v62, %v8924_v30  ;;  %v9307_v62 = vrot.slane %v1119_v41, %v8924_v30 }
 0x199   : > { %v1495_v49 = vpop.trf.xlu1  ;;  %2695 = vxpose.xlu1.b32.start.end [1/1] (short) (narrow) %v9015_v57, 8  ;;  %v1104_v57 = vcombine.high %v9209_v55, %v10699_v37  ;;  %v1089_v55 = vcombine.high %v8914_v15, %v10699_v37 }
 0x19a   : > { %v8375_v20 = vcombine.low %v5423_v6, %v5430_v35  ;;  %v8377_v27 = vcombine.high %v5423_v6, %v5430_v35  ;;  %v5399_v5 = vcombine.low %v1431_v56, %v1495_v49  ;;  %v1088_v56 = vcombine.high %v9292_v48, %v10699_v37 }
 0x19b   : > { %4455 = vxpose.xlu0.b32.start.end [1/1] (short) (narrow) %v1086_v17, 8  ;;  %v9278_v8 = vpop.trf.xlu0  ;;  %v1103_v15 = vrot.slane %v1089_v55, %v8920_v25 }
 0x19c   : > { %v9281_v33 = vrot.slane %v8375_v20, %v8920_v25  ;;  %v9284_v38 = vrot.slane %v8377_v27, %v8920_v25  ;;  %v5406_v6 = vrot.slane %v5399_v5, %v8920_v25  ;;  %v9320_v20 = vrot.slane %v1120_v42, %v8924_v30 }
 0x19d   : > { %v1463_v46 = vpop.trf.xlu1  ;;  %2759 = vxpose.xlu1.b32.start.end [1/1] (short) (narrow) %v9026_v1, 8  ;;  %v1118_v1 = vrot.slane %v1104_v57, %v8920_v25  ;;  %v1177_v5 = vrot.slane %v9224_v61, %v8920_v25 }
 0x19e   : > { %v1152_v55 = vcombine.high %v9320_v20, %v10699_v37 }
 0x19f   : > { %4519 = vxpose.xlu0.b32.start.end [1/1] (short) (narrow) %v1087_v29, 8  ;;  %v9300_v54 = vpop.trf.xlu0  ;;  %v1135_v4 = vcombine.low %v1103_v15, %v1118_v1  ;;  %v1136_v29 = vcombine.high %v1103_v15, %v1118_v1 }
 0x1a1   : > { %v1527_v3 = vpop.trf.xlu1  ;;  %2823 = vxpose.xlu1.b32.start.end [1/1] (short) (narrow) %v9035_v22, 8  ;;  %v1151_v22 = vcombine.high %v9307_v62, %v10699_v37  ;;  %v9334_v42 = vrot.slane %v1135_v4, %v8924_v30 }
 0x1a2   : > { %v5407_v35 = vcombine.low %v1463_v46, %v1527_v3 }
 0x1a3   : > { %4583 = vxpose.xlu0.b32.start.end [1/1] (short) (narrow) %v1088_v56, 8  ;;  %v9311_v39 = vpop.trf.xlu0 }
 0x1a4   : > { %v5414_v49 = vrot.slane %v5407_v35, %v8920_v25 }
 0x1a5   : > { %v9314_v17 = vpop.trf.xlu1  ;;  %2887 = vxpose.xlu1.b32.start.end [1/1] (short) (narrow) %v9042_v31, 8 }
 0x1a6   : > { %v5431_v27 = vcombine.low %v5406_v6, %v5414_v49  ;;  %v5432_v18 = vcombine.high %v5406_v6, %v5414_v49  ;;  %v1162_v6 = vrot.slane %v8916_v19, %v8920_v25 }
 0x1a7   : > { %4647 = vxpose.xlu0.b32.start.end [1/1] (short) (narrow) %v1151_v22, 8  ;;  %v9322_v57 = vpop.trf.xlu0  ;;  %v1153_v22 = vcombine.high %v9334_v42, %v10699_v37 }
 0x1a8   : > { %v5439_v41 = vrot.slane %v5431_v27, %v8924_v30  ;;  %v5446_v46 = vrot.slane %v5432_v18, %v8924_v30  ;;  %v1185_v49 = vcombine.low %v1162_v6, %v1177_v5  ;;  %v9354_v27 = vrot.slane %v1136_v29, %v8924_v30 }
 0x1a9   : > { %v9328_v31 = vpop.trf.xlu1  ;;  %2951 = vxpose.xlu1.b32.start.end [1/1] (short) (narrow) %v9049_v44, 8  ;;  %v1170_v44 = vcombine.high %v9224_v61, %v10699_v37  ;;  %v1155_v61 = vcombine.high %v8916_v19, %v10699_v37 }
 0x1aa   : > { %v8376_v3 = vcombine.low %v5439_v41, %v5446_v46  ;;  %v8378_v56 = vcombine.high %v5439_v41, %v5446_v46  ;;  %v1154_v29 = vcombine.high %v9354_v27, %v10699_v37 }
 0x1ab   : > { %4711 = vxpose.xlu0.b32.start.end [1/1] (short) (narrow) %v1152_v55, 8  ;;  %v9338_v1 = vpop.trf.xlu0  ;;  %v1186_v55 = vcombine.high %v1162_v6, %v1177_v5  ;;  %v1169_v41 = vrot.slane %v1155_v61, %v8920_v25 }
 0x1ac   : > { %v9341_v35 = vrot.slane %v8376_v3, %v8920_v25  ;;  %v9344_v15 = vrot.slane %v8378_v56, %v8920_v25  ;;  %v9371_v56 = vrot.slane %v1185_v49, %v8924_v30  ;;  %v1243_v49 = vrot.slane %v9236_v21, %v8920_v25 }
 0x1ad   : > { %v9348_v4 = vpop.trf.xlu1  ;;  %3015 = vxpose.xlu1.b32.start.end [1/1] (short) (narrow) %v9058_v51, 8  ;;  %v1184_v51 = vrot.slane %v1170_v44, %v8920_v25 }
 0x1ae   : > { %v1217_v5 = vcombine.high %v9371_v56, %v10699_v37 }
 0x1af   : > { %4775 = vxpose.xlu0.b32.start.end [1/1] (short) (narrow) %v1153_v22, 8  ;;  %v9362_v46 = vpop.trf.xlu0  ;;  %v1201_v22 = vcombine.low %v1169_v41, %v1184_v51  ;;  %v1202_v44 = vcombine.high %v1169_v41, %v1184_v51  ;;  %v1236_v41 = vcombine.high %v9236_v21, %v10699_v37 }
 0x1b0   : > { %10790 = vst [vmem:[#allocation8_spill] sm:$0xff] %v9362_v46 }
 0x1b1   : > { %v9365_v3 = vpop.trf.xlu1  ;;  %3079 = vxpose.xlu1.b32.start.end [1/1] (short) (narrow) %v9067_v58, 8  ;;  %v9382_v58 = vrot.slane %v1186_v55, %v8924_v30  ;;  %v1228_v55 = vrot.slane %v8918_v24, %v8920_v25 }
 0x1b3   : > { %4839 = vxpose.xlu0.b32.start.end [1/1] (short) (narrow) %v1154_v29, 8  ;;  %v9374_v19 = vpop.trf.xlu0  ;;  %v9394_v29 = vrot.slane %v1201_v22, %v8924_v30  ;;  %v1251_v51 = vcombine.low %v1228_v55, %v1243_v49  ;;  %v9408_v22 = vrot.slane %v1202_v44, %v8924_v30  ;;  %v1252_v21 = vcombine.high %v1228_v55, %v1243_v49 }
 0x1b4   : > { %v1235_v44 = vrot.slane %v1221_v14, %v8920_v25 }
 0x1b5   : > { %v9376_v53 = vpop.trf.xlu1  ;;  %3143 = vxpose.xlu1.b32.start.end [1/1] (short) (narrow) %v9080_v63, 8  ;;  %v1218_v63 = vcombine.high %v9382_v58, %v10699_v37  ;;  %10792 = vst [vmem:[#allocation10_spill] sm:$0xff] %v9394_v29 }
 0x1b7   : > { %4903 = vxpose.xlu0.b32.start.end [1/1] (short) (narrow) %v1217_v5, 8  ;;  %v9384_v6 = vpop.trf.xlu0 }
 0x1b8   : > { %10791 = vst [vmem:[#allocation9_spill] sm:$0xff] %v9384_v6  ;;  %v1250_v6 = vrot.slane %v1236_v41, %v8920_v25 }
 0x1b9   : > { %v9388_v61 = vpop.trf.xlu1  ;;  %3207 = vxpose.xlu1.b32.start.end [1/1] (short) (narrow) %v9089_v45, 8  ;;  %v1219_v45 = vcombine.high %v9394_v29, %v10699_v37  ;;  %v9419_v29 = vrot.slane %v1251_v51, %v8924_v30 }
 0x1ba   : > { %v1267_v24 = vcombine.low %v1235_v44, %v1250_v6  ;;  %v1268_v41 = vcombine.high %v1235_v44, %v1250_v6 }
 0x1bb   : > { %4967 = vxpose.xlu0.b32.start.end [1/1] (short) (narrow) %v1218_v63, 8  ;;  %v9398_v5 = vpop.trf.xlu0  ;;  %v1283_v49 = vcombine.high %v9419_v29, %v10699_v37 }
 0x1bc   : > { %10793 = vst [vmem:[#allocation11_spill] sm:$0xff] %v9398_v5  ;;  %v9446_v6 = vrot.slane %v1268_v41, %v8924_v30 }
 0x1bd   : > { %v9402_v18 = vpop.trf.xlu1  ;;  %3271 = vxpose.xlu1.b32.start.end [1/1] (short) (narrow) %v9098_v28, 8  ;;  %v1220_v28 = vcombine.high %v9408_v22, %v10699_v37 }
 0x1bf   : > { %5031 = vxpose.xlu0.b32.start.end [1/1] (short) (narrow) %v1219_v45, 8  ;;  %v9412_v63 = vpop.trf.xlu0 }
 0x1c0   : > { %10794 = vst [vmem:[#allocation12_spill] sm:$0xff] %v9412_v63 }
 0x1c1   : > { %v1783_v5 = vpop.trf.xlu1  ;;  %3335 = vxpose.xlu1.b32.start.end [1/1] (short) (narrow) %v9107_v47, 8  ;;  %v9430_v47 = vrot.slane %v1252_v21, %v8924_v30 }
 0x1c3   : > { %5095 = vxpose.xlu0.b32.start.end [1/1] (short) (narrow) %v1220_v28, 8  ;;  %v9422_v46 = vpop.trf.xlu0  ;;  %v1284_v14 = vcombine.high %v9430_v47, %v10699_v37  ;;  %v9438_v28 = vrot.slane %v1267_v24, %v8924_v30  ;;  %v1286_v24 = vcombine.high %v9446_v6, %v10699_v37 }
 0x1c5   : > { %v9424_v45 = vpop.trf.xlu1  ;;  %3399 = vxpose.xlu1.b32.start.end [1/1] (short) (narrow) %v9114_v52, 8  ;;  %v1285_v21 = vcombine.high %v9438_v28, %v10699_v37  ;;  %v5459_v37 = vcombine.low %v9348_v4, %v9365_v3 }
 0x1c7   : > { %5159 = vxpose.xlu0.b32.start.end [1/1] (short) (narrow) %v1283_v49, 8  ;;  %v9432_v55 = vpop.trf.xlu0 }
 0x1c9   : > { %v1879_v51 = vpop.trf.xlu1  ;;  %3463 = vxpose.xlu1.b32.start.end [1/1] (short) (narrow) %v9125_v9, 8 }
 0x1cb   : > { %5223 = vxpose.xlu0.b32.start.end [1/1] (short) (narrow) %v1284_v14, 8  ;;  %v9440_v52 = vpop.trf.xlu0 }
 0x1cd   : > { %v1911_v63 = vpop.trf.xlu1  ;;  %3527 = vxpose.xlu1.b32.start.end [1/1] (short) (narrow) %v9134_v36, 8 }
 0x1cf   : > { %5287 = vxpose.xlu0.b32.start.end [1/1] (short) (narrow) %v1285_v21, 8  ;;  %v9448_v9 = vpop.trf.xlu0 }
 0x1d0   : > { %10795 = vst [vmem:[#allocation13_spill] sm:$0xff] %v9448_v9 }
 0x1d1   : > { %v9450_v44 = vpop.trf.xlu1  ;;  %3591 = vxpose.xlu1.b32.start.end [1/1] (short) (narrow) %v9143_v23, 8 }
 0x1d3   : > { %5351 = vxpose.xlu0.b32.start.end [1/1] (short) (narrow) %v1286_v24, 8  ;;  %v9455_v49 = vpop.trf.xlu0 }
 0x1d4   : > { %10796 = vst [vmem:[#allocation14_spill] sm:$0xff] %v9455_v49 }
 0x1d5   : > { %v9457_v36 = vpop.trf.xlu1  ;;  %3655 = vxpose.xlu1.b32.start.end [1/1] (short) (narrow) %v9154_v40, 8  ;;  %v5451_v40 = vcombine.low %v9314_v17, %v9328_v31  ;;  %v5475_v17 = vcombine.low %v9402_v18, %v1783_v5 }
 0x1d7   : > { %v9460_v14 = vpop.trf.xlu0 }
 0x1d8   : > { %10797 = vst [vmem:[#allocation15_spill] sm:$0xff] %v9460_v14 }
 0x1d9   : > { %v9462_v41 = vpop.trf.xlu1  ;;  %3719 = vxpose.xlu1.b32.start.end [1/1] (short) (narrow) %v9163_v50, 8 }
 0x1db   : > { %v9465_v21 = vpop.trf.xlu0 }
 0x1dd   : > { %v9467_v9 = vpop.trf.xlu1  ;;  %3783 = vxpose.xlu1.b32.start.end [1/1] (short) (narrow) %v9172_v60, 8  ;;  %v5458_v60 = vrot.slane %v5451_v40, %v8920_v25  ;;  %v5482_v40 = vrot.slane %v5475_v17, %v8920_v25 }
 0x1df   : > { %v9470_v23 = vpop.trf.xlu0 }
 0x1e0   : > { %10798 = vst [vmem:[#allocation16_spill] sm:$0xff] %v9470_v23  ;;  %v5466_v23 = vrot.slane %v5459_v37, %v8920_v25 }
 0x1e1   : > { %v9472_v24 = vpop.trf.xlu1  ;;  %3847 = vxpose.xlu1.b32.start.end [1/1] (short) (narrow) %v9181_v16, 8  ;;  %v5467_v16 = vcombine.low %v9376_v53, %v9388_v61 }
 0x1e2   : > { %v5483_v4 = vcombine.low %v5458_v60, %v5466_v23  ;;  %v5484_v3 = vcombine.high %v5458_v60, %v5466_v23  ;;  %v5519_v23 = vcombine.low %v9424_v45, %v1879_v51  ;;  %v5527_v60 = vcombine.low %v9253_v7, %v1911_v63 }
 0x1e3   : > { %v9479_v49 = vpop.trf.xlu0 }
 0x1e4   : > { %10799 = vst [vmem:[#allocation17_spill] sm:$0xff] %v9479_v49  ;;  %v5491_v53 = vrot.slane %v5483_v4, %v8924_v30  ;;  %v5498_v18 = vrot.slane %v5484_v3, %v8924_v30  ;;  %v5526_v3 = vrot.slane %v5519_v23, %v8920_v25 }
 0x1e5   : > { %v9481_v50 = vpop.trf.xlu1  ;;  %3911 = vxpose.xlu1.b32.start.end [1/1] (short) (narrow) %v9188_v26, 8  ;;  %v5474_v26 = vrot.slane %v5467_v16, %v8920_v25 }
 0x1e6   : > { %v8379_v16 = vcombine.low %v5491_v53, %v5498_v18  ;;  %v8381_v17 = vcombine.high %v5491_v53, %v5498_v18 }
 0x1e7   : > { %v9486_v14 = vpop.trf.xlu0  ;;  %v5499_v5 = vcombine.low %v5474_v26, %v5482_v40 }
 0x1e8   : > { %10800 = vst [vmem:[#allocation18_spill] sm:$0xff] %v9486_v14  ;;  %v6547_v7 = vrot.slane %v8379_v16, %v8920_v25  ;;  %v10804_v16 = vcombine.high %v9341_v35, %v9344_v15 }
 0x1e9   : > { %v9491_v31 = vpop.trf.xlu1  ;;  %3975 = vxpose.xlu1.b32.start.end [1/1] (short) (narrow) %v9195_v34, 8  ;;  %v5500_v34 = vcombine.high %v5474_v26, %v5482_v40  ;;  %v5534_v26 = vrot.slane %v5527_v60, %v8920_v25 }
 0x1eb   : > { %v9494_v49 = vpop.trf.xlu0  ;;  %v5514_v4 = vrot.slane %v5500_v34, %v8924_v30  ;;  %v5551_v53 = vcombine.low %v5526_v3, %v5534_v26  ;;  %v5552_v18 = vcombine.high %v5526_v3, %v5534_v26  ;;  %v5543_v34 = vcombine.low %v9462_v41, %v9467_v9 }
 0x1ec   : > { %10801 = vst [vmem:[#allocation19_spill] sm:$0xff] %v9494_v49 }
 0x1ed   : > { %v9498_v37 = vpop.trf.xlu1  ;;  %4039 = vxpose.xlu1.b32.start.end [1/1] (short) (narrow) %v9204_v10, 8  ;;  %v5507_v10 = vrot.slane %v5499_v5, %v8924_v30  ;;  %v5535_v5 = vcombine.low %v9450_v44, %v9457_v36  ;;  %v5550_v3 = vrot.slane %v5543_v34, %v8920_v25 }
 0x1ef   : > { %v9503_v61 = vpop.trf.xlu0  ;;  %v8380_v45 = vcombine.low %v5507_v10, %v5514_v4  ;;  %v8382_v51 = vcombine.high %v5507_v10, %v5514_v4  ;;  %v5566_v10 = vrot.slane %v5552_v18, %v8924_v30  ;;  %v5542_v4 = vrot.slane %v5535_v5, %v8920_v25 }
 0x1f1   : > { %v9507_v14 = vpop.trf.xlu1  ;;  %4103 = vxpose.xlu1.b32.start.end [1/1] (short) (narrow) %v9215_v59, 8  ;;  %v6563_v59 = vrot.slane %v8381_v17, %v8920_v25  ;;  %v9540_v17 = vrot.slane %v10804_v16, %v8924_v30  ;;  %v6554_v9 = vrot.slane %v8380_v45, %v8920_v25  ;;  %v6570_v41 = vrot.slane %v8382_v51, %v8920_v25 }
 0x1f2   : > { %v5568_v34 = vcombine.high %v5542_v4, %v5550_v3 }
 0x1f3   : > { %v9510_v49 = vpop.trf.xlu0  ;;  %10805 = vst [vmem:[#allocation21_spill] sm:$0xff] %v9540_v17  ;;  %v6571_v44 = vcombine.low %v6547_v7, %v6563_v59  ;;  %v6572_v16 = vcombine.high %v6547_v7, %v6563_v59  ;;  %v5595_v7 = vcombine.low %v9481_v50, %v9498_v37 }
 0x1f4   : > { %v5582_v37 = vrot.slane %v5568_v34, %v8924_v30 }
 0x1f5   : > { %v9516_v40 = vpop.trf.xlu1  ;;  %4167 = vxpose.xlu1.b32.start.end [1/1] (short) (narrow) %v9222_v2, 8  ;;  %v10803_v2 = vcombine.high %v9281_v33, %v9284_v38  ;;  %v9556_v51 = vrot.slane %v6571_v44, %v8924_v30  ;;  %v9571_v44 = vrot.slane %v6572_v16, %v8924_v30 }
 0x1f7   : > { %v9521_v63 = vpop.trf.xlu0  ;;  %v9534_v60 = vrot.slane %v10803_v2, %v8924_v30  ;;  %v10807_v2 = vmov 0.0  }
 0x1f8   : > { %10802 = vst [vmem:[#allocation20_spill] sm:$0xff] %v9521_v63  ;;  %v6538_v45 = vcombine.high %v9540_v17, %v10807_v2  ;;  %v5587_v17 = vcombine.low %v9472_v24, %v9491_v31  ;;  %v6603_v59 = vcombine.high %v9556_v51, %v10807_v2  ;;  %v6604_v16 = vcombine.high %v9571_v44, %v10807_v2 }
 0x1f9   : > { %v9527_v23 = vpop.trf.xlu1  ;;  %4231 = vxpose.xlu1.b32.start.end [1/1] (short) (narrow) %v9231_v0, 8  ;;  %v5559_v0 = vrot.slane %v5551_v53, %v8924_v30  ;;  %v6587_v53 = vcombine.low %v6554_v9, %v6570_v41 }
 0x1fb   : > { %v9542_v36 = vpop.trf.xlu0  ;;  %v8383_v18 = vcombine.low %v5559_v0, %v5566_v10  ;;  %v8385_v5 = vcombine.high %v5559_v0, %v5566_v10  ;;  %v6588_v0 = vcombine.high %v6554_v9, %v6570_v41 }
 0x1fc   : > { %10806 = vst [vmem:[#allocation22_spill] sm:$0xff] %v9542_v36  ;;  %7564 = vrot.lane.b32.xlu0 %v9534_v60, %s8696_s18  ;;  %v5567_v36 = vcombine.low %v5542_v4, %v5550_v3  ;;  %v5594_v4 = vrot.slane %v5587_v17, %v8920_v25  ;;  %v5602_v3 = vrot.slane %v5595_v7, %v8920_v25 }
 0x1fd   : > { %v2295_v26 = vpop.trf.xlu1  ;;  %4295 = vxpose.xlu1.b32.start.end [1/1] (short) (narrow) %v9242_v11, 8  ;;  %v6615_v24 = vrot.slane %v8383_v18, %v8920_v25  ;;  %v6631_v31 = vrot.slane %v8385_v5, %v8920_v25  ;;  %v9592_v9 = vrot.slane %v6588_v0, %v8924_v30  ;;  %v5603_v7 = vcombine.low %v9507_v14, %v9527_v23 }
 0x1fe   : > { %v5575_v50 = vrot.slane %v5567_v36, %v8924_v30  ;;  %v5619_v5 = vcombine.low %v5594_v4, %v5602_v3  ;;  %v5620_v34 = vcombine.high %v5594_v4, %v5602_v3 }
 0x1ff   : > { %v9558_v63 = vpop.trf.xlu0  ;;  %v6639_v18 = vcombine.low %v6615_v24, %v6631_v31  ;;  %v6640_v23 = vcombine.high %v6615_v24, %v6631_v31  ;;  %v5610_v4 = vrot.slane %v5603_v7, %v8920_v25 }
 0x200   : > { %7584 = vrot.lane.b32.xlu0 %v6538_v45, %s8697_s27  ;;  %v8384_v36 = vcombine.low %v5575_v50, %v5582_v37  ;;  %v8386_v41 = vcombine.high %v5575_v50, %v5582_v37 }
 0x201   : > { %4359 = vxpose.xlu1.b32.start.end [1/1] (short) (narrow) %v9251_v43, 8  ;;  %v9562_v11 = vpop.trf.xlu1  ;;  %v9577_v43 = vrot.slane %v6587_v53, %v8924_v30  ;;  %v9611_v37 = vrot.slane %v6639_v18, %v8924_v30  ;;  %v9627_v31 = vrot.slane %v6640_v23, %v8924_v30 }
 0x202   : > { %v6622_v0 = vrot.slane %v8384_v36, %v8920_v25  ;;  %v6638_v50 = vrot.slane %v8386_v41, %v8920_v25  ;;  %v5663_v36 = vcombine.low %v9264_v13, %v9278_v8 }
 0x203   : > { %v9573_v45 = vpop.trf.xlu0  ;;  %v6671_v24 = vcombine.high %v9611_v37, %v10807_v2 }
 0x204   : > { %7592 = vrot.lane.b32.xlu0 %v6603_v59, %s8698_s29  ;;  %v5611_v59 = vcombine.low %v9516_v40, %v2295_v26  ;;  %v5627_v40 = vrot.slane %v5619_v5, %v8924_v30  ;;  %v5634_v26 = vrot.slane %v5620_v34, %v8924_v30  ;;  %v6655_v18 = vcombine.low %v6622_v0, %v6638_v50 }
 0x205   : > { %4423 = vxpose.xlu1.b32.start.end [1/1] (short) (narrow) %v9262_v32, 8  ;;  %v2391_v10 = vpop.trf.xlu1  ;;  %v6605_v32 = vcombine.high %v9577_v43, %v10807_v2  ;;  %v6656_v23 = vcombine.high %v6622_v0, %v6638_v50 }
 0x206   : > { %v5618_v3 = vrot.slane %v5611_v59, %v8920_v25  ;;  %v8387_v5 = vcombine.low %v5627_v40, %v5634_v26  ;;  %v8389_v34 = vcombine.high %v5627_v40, %v5634_v26  ;;  %v5670_v59 = vrot.slane %v5663_v36, %v8920_v25 }
 0x207   : > { %v9588_v53 = vpop.trf.xlu0  ;;  %v9654_v50 = vrot.slane %v6656_v23, %v8924_v30 }
 0x208   : > { %7600 = vrot.lane.b32.xlu0 %v6604_v16, %s8699_s30  ;;  %v5635_v7 = vcombine.low %v5610_v4, %v5618_v3  ;;  %v5636_v13 = vcombine.high %v5610_v4, %v5618_v3  ;;  %v6683_v40 = vrot.slane %v8387_v5, %v8920_v25  ;;  %v6699_v26 = vrot.slane %v8389_v34, %v8920_v25 }
 0x209   : > { %4487 = vxpose.xlu1.b32.start.end [1/1] (short) (narrow) %v9274_v12, 8  ;;  %v9597_v17 = vpop.trf.xlu1  ;;  %v6606_v12 = vcombine.high %v9592_v9, %v10807_v2 }
 0x20a   : > { %v5643_v4 = vrot.slane %v5635_v7, %v8924_v30  ;;  %v5650_v3 = vrot.slane %v5636_v13, %v8924_v30 }
 0x20b   : > { %v9602_v16 = vpop.trf.xlu0 }
 0x20c   : > { %7608 = vrot.lane.b32.xlu0 %v6605_v32, %s8700_s2  ;;  %v8388_v5 = vcombine.low %v5643_v4, %v5650_v3  ;;  %v8390_v34 = vcombine.high %v5643_v4, %v5650_v3  ;;  %v6708_v3 = vcombine.high %v6683_v40, %v6699_v26 }
 0x20d   : > { %4551 = vxpose.xlu1.b32.start.end [1/1] (short) (narrow) %v9292_v48, 8  ;;  %v2519_v14 = vpop.trf.xlu1  ;;  %v5655_v48 = vcombine.low %v9562_v11, %v2391_v10  ;;  %v6672_v11 = vcombine.high %v9627_v31, %v10807_v2  ;;  %v9640_v10 = vrot.slane %v6655_v18, %v8924_v30 }
 0x20e   : > { %v5671_v0 = vcombine.low %v9597_v17, %v2519_v14  ;;  %v6706_v23 = vrot.slane %v8390_v34, %v8920_v25 }
 0x20f   : > { %v9617_v32 = vpop.trf.xlu0  ;;  %v6673_v7 = vcombine.high %v9640_v10, %v10807_v2 }
 0x210   : > { %7616 = vrot.lane.b32.xlu0 %v6606_v12, %s8701_s5  ;;  %v5678_v14 = vrot.slane %v5671_v0, %v8920_v25 }
 0x211   : > { %4615 = vxpose.xlu1.b32.start.end [1/1] (short) (narrow) %v9307_v62, 8  ;;  %v9629_v41 = vpop.trf.xlu1  ;;  %v5662_v62 = vrot.slane %v5655_v48, %v8920_v25 }
 0x213   : > { %v9631_v8 = vpop.trf.xlu0  ;;  %v5687_v48 = vcombine.low %v5662_v62, %v5670_v59 }
 0x214   : > { %7624 = vrot.lane.b32.xlu0 %v6671_v24, %s8702_s12  ;;  %v5688_v24 = vcombine.high %v5662_v62, %v5670_v59  ;;  %v6674_v59 = vcombine.high %v9654_v50, %v10807_v2 }
 0x215   : > { %4679 = vxpose.xlu1.b32.start.end [1/1] (short) (narrow) %v9320_v20, 8  ;;  %v2647_v12 = vpop.trf.xlu1  ;;  %v5679_v20 = vcombine.low %v9300_v54, %v9311_v39  ;;  %v6707_v54 = vcombine.low %v6683_v40, %v6699_v26  ;;  %v9687_v26 = vrot.slane %v6708_v3, %v8924_v30  ;;  %v10809_v3 = vld [vmem:[#allocation8_spill] sm:$0xff] }
 0x216   : > { %v5702_v17 = vrot.slane %v5688_v24, %v8924_v30  ;;  %v5723_v34 = vcombine.low %v9629_v41, %v2647_v12 }
 0x217   : > { %v9646_v36 = vpop.trf.xlu0  ;;  %v5686_v13 = vrot.slane %v5679_v20, %v8920_v25  ;;  %v9673_v4 = vrot.slane %v6707_v54, %v8924_v30 }
 0x218   : > { %7632 = vrot.lane.b32.xlu0 %v6672_v11, %s8703_s13  ;;  %v6690_v11 = vrot.slane %v8388_v5, %v8920_v25 }
 0x219   : > { %4743 = vxpose.xlu1.b32.start.end [1/1] (short) (narrow) %v9334_v42, 8  ;;  %v9656_v18 = vpop.trf.xlu1  ;;  %v5695_v42 = vrot.slane %v5687_v48, %v8924_v30  ;;  %v5731_v48 = vcombine.low %v9322_v57, %v9338_v1  ;;  %v5703_v0 = vcombine.low %v5678_v14, %v5686_v13  ;;  %v6739_v40 = vcombine.high %v9673_v4, %v10807_v2 }
 0x21a   : > { %v6723_v57 = vcombine.low %v6690_v11, %v6706_v23  ;;  %v6724_v54 = vcombine.high %v6690_v11, %v6706_v23 }
 0x21b   : > { %v9660_v39 = vpop.trf.xlu0  ;;  %v8393_v24 = vcombine.high %v5695_v42, %v5702_v17 }
 0x21c   : > { %7640 = vrot.lane.b32.xlu0 %v6673_v7, %s8704_s15  ;;  %v5704_v7 = vcombine.high %v5678_v14, %v5686_v13  ;;  %v5730_v14 = vrot.slane %v5723_v34, %v8920_v25  ;;  %v9702_v11 = vrot.slane %v6723_v57, %v8924_v30 }
 0x21d   : > { %4807 = vxpose.xlu1.b32.start.end [1/1] (short) (narrow) %v9354_v27, 8  ;;  %v2775_v62 = vpop.trf.xlu1  ;;  %v8391_v27 = vcombine.low %v5695_v42, %v5702_v17  ;;  %v5711_v42 = vrot.slane %v5703_v0, %v8924_v30  ;;  %v5738_v17 = vrot.slane %v5731_v48, %v8920_v25  ;;  %v10810_v0 = vld [vmem:[#allocation10_spill] sm:$0xff]  ;;  %v9711_v48 = vrot.slane %v6724_v54, %v8924_v30 }
 0x21e   : > { %v5718_v41 = vrot.slane %v5704_v7, %v8924_v30 }
 0x21f   : > { %v9675_v20 = vpop.trf.xlu0  ;;  %v6751_v13 = vrot.slane %v8391_v27, %v8920_v25  ;;  %v5747_v27 = vcombine.low %v10809_v3, %v9374_v19  ;;  %v5756_v57 = vcombine.high %v5730_v14, %v5738_v17  ;;  %v6741_v19 = vcombine.high %v9702_v11, %v10807_v2 }
 0x220   : > { %7648 = vrot.lane.b32.xlu0 %v6674_v59, %s8705_s16  ;;  %v6740_v59 = vcombine.high %v9687_v26, %v10807_v2 }
 0x221   : > { %4871 = vxpose.xlu1.b32.start.end [1/1] (short) (narrow) %v9371_v56, 8  ;;  %v9681_v5 = vpop.trf.xlu1  ;;  %v6767_v56 = vrot.slane %v8393_v24, %v8920_v25  ;;  %v8394_v24 = vcombine.high %v5711_v42, %v5718_v41  ;;  %v5754_v3 = vrot.slane %v5747_v27, %v8920_v25 }
 0x223   : > { %v9689_v1 = vpop.trf.xlu0  ;;  %v6775_v34 = vcombine.low %v6751_v13, %v6767_v56 }
 0x224   : > { %7656 = vrot.lane.b32.xlu0 %v6739_v40, %s10731_s17  ;;  %v5755_v40 = vcombine.low %v5730_v14, %v5738_v17  ;;  %s8732_s17 = smov 20  }
 0x225   : > { %4935 = vxpose.xlu1.b32.start.end [1/1] (short) (narrow) %v9382_v58, 8  ;;  %v2903_v12 = vpop.trf.xlu1  ;;  %v8392_v58 = vcombine.low %v5711_v42, %v5718_v41  ;;  %v6774_v41 = vrot.slane %v8394_v24, %v8920_v25  ;;  %v9726_v17 = vrot.slane %v6775_v34, %v8924_v30 }
 0x226   : > { %v5763_v14 = vrot.slane %v5755_v40, %v8924_v30  ;;  %v5791_v24 = vcombine.low %v9681_v5, %v2903_v12 }
 0x227   : > { %v9704_v23 = vpop.trf.xlu0  ;;  %v6758_v54 = vrot.slane %v8392_v58, %v8920_v25  ;;  %v10813_v58 = vld [vmem:[#allocation9_spill] sm:$0xff] }
 0x228   : > { %10808 = vst [vmem:[#allocation23_spill] sm:$0xff] %v9704_v23  ;;  %7664 = vrot.lane.b32.xlu0 %v6740_v59, %s10727_s22  ;;  %v5739_v23 = vcombine.low %v9656_v18, %v2775_v62  ;;  %v6776_v62 = vcombine.high %v6751_v13, %v6767_v56  ;;  %v5770_v59 = vrot.slane %v5756_v57, %v8924_v30  ;;  %s10732_s22 = smov 126  }
 0x229   : > { %4999 = vxpose.xlu1.b32.start.end [1/1] (short) (narrow) %v10810_v0, 8  ;;  %v9713_v7 = vpop.trf.xlu1  ;;  %v6742_v0 = vcombine.high %v9711_v48, %v10807_v2  ;;  %v5798_v12 = vrot.slane %v5791_v24, %v8920_v25 }
 0x22a   : > { %v5746_v27 = vrot.slane %v5739_v23, %v8920_v25  ;;  %v9741_v13 = vrot.slane %v6776_v62, %v8924_v30  ;;  %v6791_v23 = vcombine.low %v6758_v54, %v6774_v41  ;;  %v8395_v34 = vcombine.low %v5763_v14, %v5770_v59 }
 0x22b   : > { %v9720_v42 = vpop.trf.xlu0  ;;  %v8397_v40 = vcombine.high %v5763_v14, %v5770_v59  ;;  %v6792_v59 = vcombine.high %v6758_v54, %v6774_v41 }
 0x22c   : > { %7672 = vrot.lane.b32.xlu0 %v6741_v19, %s10725_s23  ;;  %10811 = vst [vmem:[#allocation8_spill] sm:$0xff] %v9720_v42  ;;  %v10812_v19 = vld [vmem:[#allocation11_spill] sm:$0xff]  ;;  %v5771_v57 = vcombine.low %v5746_v27, %v5754_v3  ;;  %v9754_v62 = vrot.slane %v6791_v23, %v8924_v30  ;;  %v10815_v23 = vld [vmem:[#allocation12_spill] sm:$0xff]  ;;  %s10726_s23 = smov 122  }
 0x22d   : > { %5063 = vxpose.xlu1.b32.start.end [1/1] (short) (narrow) %v9408_v22, 8  ;;  %v3031_v18 = vpop.trf.xlu1  ;;  %v5799_v42 = vcombine.low %v10813_v58, %v10812_v19  ;;  %v6807_v22 = vcombine.high %v9726_v17, %v10807_v2  ;;  %v5772_v19 = vcombine.high %v5746_v27, %v5754_v3  ;;  %v6819_v3 = vrot.slane %v8395_v34, %v8920_v25 }
 0x22e   : > { %v6835_v27 = vrot.slane %v8397_v40, %v8920_v25  ;;  %v5807_v54 = vcombine.low %v9713_v7, %v3031_v18  ;;  %v9768_v41 = vrot.slane %v6792_v59, %v8924_v30 }
 0x22f   : > { %v9745_v58 = vpop.trf.xlu0  ;;  %v5806_v5 = vrot.slane %v5799_v42, %v8920_v25  ;;  %v5779_v42 = vrot.slane %v5771_v57, %v8924_v30 }
 0x230   : > { %7680 = vrot.lane.b32.xlu0 %v6742_v0, %s10722_s24  ;;  %10814 = vst [vmem:[#allocation10_spill] sm:$0xff] %v9745_v58  ;;  %v5786_v0 = vrot.slane %v5772_v19, %v8924_v30  ;;  %v5815_v58 = vcombine.low %v10815_v23, %v9422_v46  ;;  %10816 = vst [vmem:[#allocation11_spill] sm:$0xff] %v9768_v41  ;;  %v6809_v19 = vcombine.high %v9754_v62, %v10807_v2  ;;  %s8726_s24 = smov 10  }
 0x231   : > { %5127 = vxpose.xlu1.b32.start.end [1/1] (short) (narrow) %v9419_v29, 8  ;;  %v9743_v56 = vpop.trf.xlu1  ;;  %v6808_v29 = vcombine.high %v9741_v13, %v10807_v2  ;;  %v5823_v24 = vcombine.low %v5798_v12, %v5806_v5  ;;  %v6810_v7 = vcombine.high %v9768_v41, %v10807_v2 }
 0x232   : > { %v8396_v40 = vcombine.low %v5779_v42, %v5786_v0  ;;  %v8398_v57 = vcombine.high %v5779_v42, %v5786_v0  ;;  %v5822_v46 = vrot.slane %v5815_v58, %v8920_v25 }
 0x234   : > { %7688 = vrot.lane.b32.xlu0 %v6807_v22, %s10721_s25  ;;  %v5824_v22 = vcombine.high %v5798_v12, %v5806_v5  ;;  %v6843_v5 = vcombine.low %v6819_v3, %v6835_v27  ;;  %v5831_v12 = vrot.slane %v5823_v24, %v8924_v30  ;;  %v6826_v59 = vrot.slane %v8396_v40, %v8920_v25  ;;  %s10723_s25 = smov 114  }
 0x235   : > { %5191 = vxpose.xlu1.b32.start.end [1/1] (short) (narrow) %v9430_v47, 8  ;;  %v3159_v14 = vpop.trf.xlu1  ;;  %v9761_v47 = vpop.trf.xlu0  ;;  %v6842_v42 = vrot.slane %v8398_v57, %v8920_v25  ;;  %v6844_v24 = vcombine.high %v6819_v3, %v6835_v27  ;;  %v10818_v57 = vld [vmem:[#allocation15_spill] sm:$0xff] }
 0x236   : > { %v9787_v0 = vrot.slane %v6843_v5, %v8924_v30  ;;  %v5859_v40 = vcombine.low %v9743_v56, %v3159_v14  ;;  %v5935_v5 = vcombine.low %v10818_v57, %v9465_v21  ;;  %v10822_v57 = vld [vmem:[#allocation13_spill] sm:$0xff] }
 0x237   : > { %v9800_v27 = vrot.slane %v6844_v24, %v8924_v30 }
 0x238   : > { %7696 = vrot.lane.b32.xlu0 %v6808_v29, %s10716_s3  ;;  %v5838_v29 = vrot.slane %v5824_v22, %v8924_v30  ;;  %v6875_v3 = vcombine.high %v9787_v0, %v10807_v2  ;;  %v5942_v24 = vrot.slane %v5935_v5, %v8920_v25  ;;  %s10720_s3 = smov 110  }
 0x239   : > { %5255 = vxpose.xlu1.b32.start.end [1/1] (short) (narrow) %v9438_v28, 8  ;;  %v9770_v34 = vpop.trf.xlu1  ;;  %v5814_v28 = vrot.slane %v5807_v54, %v8920_v25  ;;  %v9789_v22 = vpop.trf.xlu0  ;;  %10819 = vst [vmem:[#allocation12_spill] sm:$0xff] %v9800_v27 }
 0x23a   : > { %10817 = vst [vmem:[#allocation9_spill] sm:$0xff] %v9789_v22  ;;  %v8399_v58 = vcombine.low %v5831_v12, %v5838_v29  ;;  %v8401_v23 = vcombine.high %v5831_v12, %v5838_v29  ;;  %v6859_v12 = vcombine.low %v6826_v59, %v6842_v42 }
 0x23b   : > { %v5839_v54 = vcombine.low %v5814_v28, %v5822_v46 }
 0x23c   : > { %7704 = vrot.lane.b32.xlu0 %v6809_v19, %s10714_s4  ;;  %v5840_v19 = vcombine.high %v5814_v28, %v5822_v46  ;;  %v6887_v29 = vrot.slane %v8399_v58, %v8920_v25  ;;  %v5866_v46 = vrot.slane %v5859_v40, %v8920_v25  ;;  %v6876_v58 = vcombine.high %v9800_v27, %v10807_v2  ;;  %s10715_s4 = smov 106  }
 0x23d   : > { %5319 = vxpose.xlu1.b32.start.end [1/1] (short) (narrow) %v9446_v6, 8  ;;  %v9782_v18 = vpop.trf.xlu1  ;;  %v5867_v6 = vcombine.low %v9432_v55, %v9440_v52  ;;  %v6860_v55 = vcombine.high %v6826_v59, %v6842_v42  ;;  %v9805_v52 = vpop.trf.xlu0  ;;  %v5847_v21 = vrot.slane %v5839_v54, %v8924_v30  ;;  %v10821_v42 = vld [vmem:[#allocation14_spill] sm:$0xff] }
 0x23e   : > { %10820 = vst [vmem:[#allocation15_spill] sm:$0xff] %v9805_v52  ;;  %v5854_v14 = vrot.slane %v5840_v19, %v8924_v30 }
 0x23f   : > { %v5874_v56 = vrot.slane %v5867_v6, %v8920_v25  ;;  %v9822_v54 = vrot.slane %v6860_v55, %v8924_v30 }
 0x240   : > { %7712 = vrot.lane.b32.xlu0 %v6810_v7, %s10704_s28  ;;  %v6903_v7 = vrot.slane %v8401_v23, %v8920_v25  ;;  %s10705_s28 = smov 82   ;;  %v9815_v23 = vrot.slane %v6859_v12, %v8924_v30  ;;  %v8400_v40 = vcombine.low %v5847_v21, %v5854_v14  ;;  %v8402_v5 = vcombine.high %v5847_v21, %v5854_v14 }
 0x241   : > { %v3351_v41 = vpop.trf.xlu1  ;;  %v5891_v22 = vcombine.low %v5866_v46, %v5874_v56  ;;  %v5892_v27 = vcombine.high %v5866_v46, %v5874_v56 }
 0x242   : > { %v6911_v19 = vcombine.low %v6887_v29, %v6903_v7  ;;  %v6877_v12 = vcombine.high %v9815_v23, %v10807_v2  ;;  %v6910_v46 = vrot.slane %v8402_v5, %v8920_v25 }
 0x244   : > { %7720 = vrot.lane.b32.xlu0 %v6875_v3, %s10705_s28  ;;  %v5883_v3 = vcombine.low %v10822_v57, %v10821_v42  ;;  %s10707_s28 = smov 86   ;;  %v9830_v42 = vpop.trf.xlu0  ;;  %v9837_v14 = vrot.slane %v6911_v19, %v8924_v30 }
 0x245   : > { %v3415_v28 = vpop.trf.xlu1 }
 0x246   : > { %v5927_v59 = vcombine.low %v3351_v41, %v3415_v28  ;;  %v5875_v41 = vcombine.low %v9770_v34, %v9782_v18  ;;  %v5890_v55 = vrot.slane %v5883_v3, %v8920_v25  ;;  %10823 = vst [vmem:[#allocation14_spill] sm:$0xff] %v9837_v14  ;;  %v6912_v34 = vcombine.high %v6887_v29, %v6903_v7 }
 0x247   : > { %v6894_v18 = vrot.slane %v8400_v40, %v8920_v25  ;;  %v6943_v19 = vcombine.high %v9837_v14, %v10807_v2 }
 0x248   : > { %7728 = vrot.lane.b32.xlu0 %v6876_v58, %s10707_s28  ;;  %v5934_v6 = vrot.slane %v5927_v59, %v8920_v25  ;;  %s10708_s28 = smov 90   ;;  %v5906_v59 = vrot.slane %v5892_v27, %v8924_v30  ;;  %v5882_v3 = vrot.slane %v5875_v41, %v8920_v25  ;;  %v9847_v29 = vpop.trf.xlu0  ;;  %v9858_v40 = vrot.slane %v6912_v34, %v8924_v30 }
 0x249   : > { %v9824_v52 = vpop.trf.xlu1  ;;  %v6927_v41 = vcombine.low %v6894_v18, %v6910_v46  ;;  %v10826_v34 = vcombine.low %v9281_v33, %v9284_v38  ;;  %v10830_v33 = vld [vmem:[#allocation17_spill] sm:$0xff]  ;;  %v10831_v38 = vld [vmem:[#allocation16_spill] sm:$0xff] }
 0x24a   : > { %v5959_v28 = vcombine.low %v5934_v6, %v5942_v24  ;;  %v5960_v58 = vcombine.high %v5934_v6, %v5942_v24  ;;  %v5899_v24 = vrot.slane %v5891_v22, %v8924_v30  ;;  %10825 = vst [vmem:[#allocation24_spill] sm:$0xff] %v9858_v40 }
 0x24b   : > { %v9874_v14 = vrot.slane %v6927_v41, %v8924_v30 }
 0x24c   : > { %7736 = vrot.lane.b32.xlu0 %v6877_v12, %s10708_s28  ;;  %v5967_v21 = vrot.slane %v5959_v28, %v8924_v30  ;;  %v5974_v56 = vrot.slane %v5960_v58, %v8924_v30  ;;  %v6878_v28 = vcombine.high %v9822_v54, %v10807_v2  ;;  %s10709_s28 = smov 94   ;;  %v8403_v27 = vcombine.low %v5899_v24, %v5906_v59 }
 0x24d   : > { %v3543_v57 = vpop.trf.xlu1  ;;  %v8405_v58 = vcombine.high %v5899_v24, %v5906_v59  ;;  %10828 = vst [vmem:[#allocation26_spill] sm:$0xff] %v9874_v14 }
 0x24e   : > { %v8407_v6 = vcombine.low %v5967_v21, %v5974_v56  ;;  %v8409_v12 = vcombine.high %v5967_v21, %v5974_v56  ;;  %v5907_v21 = vcombine.low %v5882_v3, %v5890_v55  ;;  %v5908_v56 = vcombine.high %v5882_v3, %v5890_v55 }
 0x24f   : > { %v6928_v55 = vcombine.high %v6894_v18, %v6910_v46  ;;  %v6955_v59 = vrot.slane %v8403_v27, %v8920_v25  ;;  %v6971_v3 = vrot.slane %v8405_v58, %v8920_v25  ;;  %v5943_v41 = vcombine.low %v9824_v52, %v3543_v57 }
 0x250   : > { %7744 = vrot.lane.b32.xlu0 %v6878_v28, %s10709_s28  ;;  %v9850_v7 = vrot.slane %v8407_v6, %v8920_v25  ;;  %v9853_v22 = vrot.slane %v8409_v12, %v8920_v25  ;;  %s10712_s28 = smov 98   ;;  %v6944_v12 = vcombine.high %v9858_v40, %v10807_v2  ;;  %v9871_v28 = vrot.slane %v10826_v34, %v8924_v30  ;;  %v9880_v40 = vpop.trf.xlu0 }
 0x251   : > { %v9860_v5 = vpop.trf.xlu1  ;;  %v5922_v6 = vrot.slane %v5908_v56, %v8924_v30  ;;  %10829 = vst [vmem:[#allocation27_spill] sm:$0xff] %v9880_v40  ;;  %v5951_v34 = vcombine.low %v10831_v38, %v10830_v33  ;;  %v9889_v46 = vrot.slane %v6928_v55, %v8924_v30  ;;  %v6945_v56 = vcombine.high %v9874_v14, %v10807_v2 }
 0x252   : > { %10824 = vst [vmem:[#allocation13_spill] sm:$0xff] %v9853_v22  ;;  %10827 = vst [vmem:[#allocation25_spill] sm:$0xff] %v9871_v28  ;;  %v6535_v18 = vcombine.high %v9871_v28, %v10807_v2  ;;  %v6979_v40 = vcombine.low %v6955_v59, %v6971_v3  ;;  %v6536_v55 = vcombine.high %v9534_v60, %v10807_v2  ;;  %v10834_v60 = vld [vmem:[#allocation18_spill] sm:$0xff] }
 0x253   : > { %10832 = vst [vmem:[#allocation17_spill] sm:$0xff] %v9889_v46  ;;  %v5958_v57 = vrot.slane %v5951_v34, %v8920_v25  ;;  %v10833_v34 = vld [vmem:[#allocation19_spill] sm:$0xff] }
 0x254   : > { %7752 = vrot.lane.b32.xlu0 %v6943_v19, %s10712_s28  ;;  %v5915_v19 = vrot.slane %v5907_v21, %v8924_v30  ;;  %s10713_s28 = smov 102   ;;  %v9897_v52 = vpop.trf.xlu0 }
 0x255   : > { %v3671_v24 = vpop.trf.xlu1 }
 0x256   : > { %v8404_v58 = vcombine.low %v5915_v19, %v5922_v6  ;;  %v8406_v21 = vcombine.high %v5915_v19, %v5922_v6  ;;  %v6946_v6 = vcombine.high %v9889_v46, %v10807_v2 }
 0x258   : > { %7760 = vrot.lane.b32.xlu0 %v6944_v12, %s10713_s28  ;;  %s8720_s28 = smov 2   ;;  %v5950_v12 = vrot.slane %v5943_v41, %v8920_v25  ;;  %v6962_v33 = vrot.slane %v8404_v58, %v8920_v25  ;;  %v6978_v38 = vrot.slane %v8406_v21, %v8920_v25  ;;  %v6003_v41 = vcombine.low %v10834_v60, %v10833_v34 }
 0x259   : > { %v9891_v27 = vpop.trf.xlu1  ;;  %v10835_v58 = vcombine.low %v9341_v35, %v9344_v15 }
 0x25a   : > { %v5975_v28 = vcombine.low %v5950_v12, %v5958_v57  ;;  %v5976_v46 = vcombine.high %v5950_v12, %v5958_v57  ;;  %v6996_v57 = vcombine.high %v6962_v33, %v6978_v38  ;;  %v6010_v12 = vrot.slane %v6003_v41, %v8920_v25 }
 0x25b   : > { %7560 = vrot.lane.b32.xlu1 %v6535_v18, %s8720_s28  ;;  %v9908_v18 = vrot.slane %v6979_v40, %v8924_v30  ;;  %v6527_v21 = vrot.slane %v10835_v58, %v8924_v30  ;;  %v5995_v40 = vcombine.low %v9860_v5, %v3671_v24 }
 0x25c   : > { %7768 = vrot.lane.b32.xlu0 %v6945_v56, %s10715_s4  ;;  %v6980_v56 = vcombine.high %v6955_v59, %v6971_v3  ;;  %s8722_s4 = smov 6   ;;  %v9923_v3 = vpop.trf.xlu0  ;;  %v5983_v35 = vrot.slane %v5975_v28, %v8924_v30  ;;  %v5990_v15 = vrot.slane %v5976_v46, %v8924_v30  ;;  %v6019_v46 = vcombine.low %v9503_v61, %v9510_v49 }
 0x25d   : > { %v3799_v19 = vpop.trf.xlu1  ;;  %v7011_v59 = vcombine.high %v9908_v18, %v10807_v2  ;;  %v6537_v5 = vcombine.high %v6527_v21, %v10807_v2  ;;  %v9947_v41 = vrot.slane %v6996_v57, %v8924_v30  ;;  %v7048_v61 = vcombine.high %v9850_v7, %v9853_v22 }
 0x25e   : > { %v6026_v49 = vrot.slane %v6019_v46, %v8920_v25  ;;  %v10839_v46 = vld [vmem:[#allocation22_spill] sm:$0xff] }
 0x25f   : > { %7568 = vrot.lane.b32.xlu1 %v6536_v55, %s8722_s4  ;;  %v9926_v55 = vrot.slane %v6980_v56, %v8924_v30  ;;  %v6002_v56 = vrot.slane %v5995_v40, %v8920_v25  ;;  %10836 = vst [vmem:[#allocation16_spill] sm:$0xff] %v9947_v41 }
 0x260   : > { %7776 = vrot.lane.b32.xlu0 %v6946_v6, %s10720_s3  ;;  %v6995_v6 = vcombine.low %v6962_v33, %v6978_v38  ;;  %s8724_s3 = smov 8   ;;  %v9942_v28 = vpop.trf.xlu0  ;;  %v8408_v33 = vcombine.low %v5983_v35, %v5990_v15  ;;  %v8410_v38 = vcombine.high %v5983_v35, %v5990_v15 }
 0x261   : > { %v9918_v14 = vpop.trf.xlu1  ;;  %v7012_v34 = vcombine.high %v9926_v55, %v10807_v2  ;;  %v6028_v40 = vcombine.high %v6002_v56, %v6010_v12 }
 0x262   : > { %v9938_v60 = vrot.slane %v6995_v6, %v8924_v30  ;;  %v7030_v15 = vrot.slane %v8408_v33, %v8920_v25  ;;  %v10840_v33 = vld [vmem:[#allocation20_spill] sm:$0xff] }
 0x263   : > { %7572 = vrot.lane.b32.xlu1 %v6527_v21, %s8724_s3  ;;  %v6027_v21 = vcombine.low %v6002_v56, %v6010_v12  ;;  %v6042_v57 = vrot.slane %v6028_v40, %v8924_v30  ;;  %v9976_v40 = vrot.slane %v7048_v61, %v8924_v30 }
 0x264   : > { %7784 = vrot.lane.b32.xlu0 %v7011_v59, %s10723_s25  ;;  %s10724_s25 = smov 118   ;;  %v6011_v59 = vcombine.low %v9891_v27, %v3799_v19  ;;  %v7013_v6 = vcombine.high %v9938_v60, %v10807_v2  ;;  %v7046_v27 = vrot.slane %v8410_v38, %v8920_v25  ;;  %v6071_v38 = vcombine.low %v10840_v33, %v10839_v46 }
 0x265   : > { %v3927_v24 = vpop.trf.xlu1  ;;  %v6035_v19 = vrot.slane %v6027_v21, %v8924_v30 }
 0x266   : > { %v6018_v12 = vrot.slane %v6011_v59, %v8920_v25  ;;  %v6063_v21 = vcombine.low %v9918_v14, %v3927_v24  ;;  %v7063_v59 = vcombine.low %v7030_v15, %v7046_v27  ;;  %v7064_v61 = vcombine.high %v7030_v15, %v7046_v27 }
 0x267   : > { %7576 = vrot.lane.b32.xlu1 %v6537_v5, %s8726_s24  ;;  %v10837_v5 = vld [vmem:[#allocation21_spill] sm:$0xff]  ;;  %v6087_v15 = vcombine.low %v9558_v63, %v9573_v45 }
 0x268   : > { %7792 = vrot.lane.b32.xlu0 %v7012_v34, %s10724_s25  ;;  %s8728_s25 = smov 12   ;;  %v7014_v34 = vcombine.high %v9947_v41, %v10807_v2  ;;  %v8413_v2 = vcombine.high %v6035_v19, %v6042_v57  ;;  %v6043_v41 = vcombine.low %v6018_v12, %v6026_v49  ;;  %v6070_v14 = vrot.slane %v6063_v21, %v8920_v25 }
 0x269   : > { %v9949_v58 = vpop.trf.xlu1  ;;  %v9989_v24 = vrot.slane %v7063_v59, %v8924_v30  ;;  %v6094_v63 = vrot.slane %v6087_v15, %v8920_v25 }
 0x26b   : > { %7580 = vrot.lane.b32.xlu1 %v10837_v5, %s8728_s25  ;;  %v8411_v5 = vcombine.low %v6035_v19, %v6042_v57 }
 0x26c   : > { %7800 = vrot.lane.b32.xlu0 %v7013_v6, %s10726_s23  ;;  %s8730_s23 = smov 16  }
 0x26d   : > { %v4055_v35 = vpop.trf.xlu1 }
 0x26e   : > { %v9965_v56 = vpop.permute.xlu0 %7564 }
 0x26f   : > { %10838 = vst [vmem:[#allocation19_spill] sm:$0xff] %v9965_v56  ;;  %7588 = vrot.lane.b32.xlu1 %v9556_v51, %s8730_s23  ;;  %v6044_v56 = vcombine.high %v6018_v12, %v6026_v49  ;;  %v6078_v51 = vrot.slane %v6071_v38, %v8920_v25  ;;  %v6051_v49 = vrot.slane %v6043_v41, %v8924_v30 }
 0x270   : > { %7808 = vrot.lane.b32.xlu0 %v7014_v34, %s10732_s22  ;;  %v7107_v34 = vrot.slane %v8413_v2, %v8920_v25  ;;  %v6079_v2 = vcombine.low %v9949_v58, %v4055_v35  ;;  %s8734_s22 = smov 28  }
 0x271   : > { %v9978_v6 = vpop.trf.xlu1  ;;  %v6058_v57 = vrot.slane %v6044_v56, %v8924_v30  ;;  %v6095_v27 = vcombine.low %v6070_v14, %v6078_v51  ;;  %v6096_v41 = vcombine.high %v6070_v14, %v6078_v51  ;;  %v10004_v56 = vrot.slane %v7064_v61, %v8924_v30 }
 0x272   : > { %v9980_v22 = vpop.permute.xlu0 %7584  ;;  %v6086_v58 = vrot.slane %v6079_v2, %v8920_v25 }
 0x273   : > { %7596 = vrot.lane.b32.xlu1 %v9571_v44, %s8732_s17  ;;  %v7091_v44 = vrot.slane %v8411_v5, %v8920_v25  ;;  %v8412_v33 = vcombine.low %v6051_v49, %v6058_v57  ;;  %v8414_v38 = vcombine.high %v6051_v49, %v6058_v57  ;;  %v6103_v45 = vrot.slane %v6095_v27, %v8924_v30 }
 0x274   : > { %7816 = vrot.lane.b32.xlu0 %v9976_v40, %s8696_s18  ;;  %s8733_s18 = smov 24   ;;  %v6139_v49 = vcombine.low %v9588_v53, %v9602_v16  ;;  %v6111_v27 = vcombine.low %v6086_v58, %v6094_v63 }
 0x275   : > { %v4183_v19 = vpop.trf.xlu1  ;;  %v7115_v59 = vcombine.low %v7091_v44, %v7107_v34  ;;  %v7116_v5 = vcombine.high %v7091_v44, %v7107_v34  ;;  %v7114_v61 = vrot.slane %v8414_v38, %v8920_v25 }
 0x276   : > { %v9993_v12 = vpop.permute.xlu0 %7592  ;;  %v6146_v53 = vrot.slane %v6139_v49, %v8920_v25 }
 0x277   : > { %7604 = vrot.lane.b32.xlu1 %v9577_v43, %s8733_s18  ;;  %v6110_v43 = vrot.slane %v6096_v41, %v8924_v30  ;;  %v10020_v14 = vrot.slane %v7115_v59, %v8924_v30  ;;  %v10031_v34 = vrot.slane %v7116_v5, %v8924_v30  ;;  %v6112_v41 = vcombine.high %v6086_v58, %v6094_v63 }
 0x278   : > { %7824 = vrot.lane.b32.xlu0 %v9989_v24, %s8724_s3  ;;  %s8736_s3 = smov 36   ;;  %v6155_v5 = vcombine.low %v9617_v32, %v9631_v8 }
 0x279   : > { %v4247_v46 = vpop.trf.xlu1  ;;  %v8415_v57 = vcombine.low %v6103_v45, %v6110_v43  ;;  %v8417_v44 = vcombine.high %v6103_v45, %v6110_v43 }
 0x27a   : > { %v10007_v21 = vpop.permute.xlu0 %7600  ;;  %v6162_v32 = vrot.slane %v6155_v5, %v8920_v25 }
 0x27b   : > { %7612 = vrot.lane.b32.xlu1 %v9592_v9, %s8734_s22  ;;  %v7098_v9 = vrot.slane %v8412_v33, %v8920_v25  ;;  %v6131_v33 = vcombine.low %v9978_v6, %v4183_v19  ;;  %v7159_v59 = vrot.slane %v8415_v57, %v8920_v25  ;;  %v7175_v63 = vrot.slane %v8417_v44, %v8920_v25 }
 0x27c   : > { %7832 = vrot.lane.b32.xlu0 %v10004_v56, %s8728_s25  ;;  %s8735_s25 = smov 32   ;;  %v6119_v6 = vrot.slane %v6111_v27, %v8924_v30  ;;  %v6126_v19 = vrot.slane %v6112_v41, %v8924_v30 }
 0x27d   : > { %v4311_v51 = vpop.trf.xlu1  ;;  %v7132_v16 = vcombine.high %v7098_v9, %v7114_v61  ;;  %v6138_v45 = vrot.slane %v6131_v33, %v8920_v25 }
 0x27e   : > { %v10017_v35 = vpop.permute.xlu0 %7608  ;;  %v6147_v58 = vcombine.low %v4247_v46, %v4311_v51  ;;  %v8416_v57 = vcombine.low %v6119_v6, %v6126_v19  ;;  %v8418_v44 = vcombine.high %v6119_v6, %v6126_v19  ;;  %v7184_v46 = vcombine.high %v7159_v59, %v7175_v63 }
 0x27f   : > { %7620 = vrot.lane.b32.xlu1 %v9611_v37, %s8735_s25  ;;  %v7131_v37 = vcombine.low %v7098_v9, %v7114_v61  ;;  %v10060_v9 = vrot.slane %v7132_v16, %v8924_v30  ;;  %v7183_v61 = vcombine.low %v7159_v59, %v7175_v63  ;;  %v6163_v27 = vcombine.low %v6138_v45, %v6146_v53 }
 0x280   : > { %7840 = vrot.lane.b32.xlu0 %v10020_v14, %s8730_s23  ;;  %s8737_s23 = smov 40   ;;  %v6164_v41 = vcombine.high %v6138_v45, %v6146_v53  ;;  %v6154_v8 = vrot.slane %v6147_v58, %v8920_v25  ;;  %v7182_v16 = vrot.slane %v8418_v44, %v8920_v25  ;;  %v6207_v59 = vcombine.low %v9646_v36, %v9660_v39 }
 0x281   : > { %v10033_v15 = vpop.trf.xlu1  ;;  %v10049_v43 = vrot.slane %v7131_v37, %v8924_v30  ;;  %v6171_v33 = vrot.slane %v6163_v27, %v8924_v30  ;;  %v10086_v19 = vrot.slane %v7184_v46, %v8924_v30 }
 0x282   : > { %v10036_v38 = vpop.permute.xlu0 %7616  ;;  %v6178_v37 = vrot.slane %v6164_v41, %v8924_v30  ;;  %v6179_v63 = vcombine.low %v6154_v8, %v6162_v32  ;;  %v6180_v6 = vcombine.high %v6154_v8, %v6162_v32  ;;  %v6214_v36 = vrot.slane %v6207_v59, %v8920_v25 }
 0x283   : > { %7628 = vrot.lane.b32.xlu1 %v9627_v31, %s8736_s3  ;;  %v6223_v8 = vcombine.low %v9675_v20, %v9689_v1 }
 0x284   : > { %7848 = vrot.lane.b32.xlu0 %v10031_v34, %s8732_s17  ;;  %s8738_s17 = smov 44   ;;  %v8419_v5 = vcombine.low %v6171_v33, %v6178_v37  ;;  %v8421_v58 = vcombine.high %v6171_v33, %v6178_v37  ;;  %v6187_v39 = vrot.slane %v6179_v63, %v8924_v30  ;;  %v6194_v44 = vrot.slane %v6180_v6, %v8924_v30 }
 0x285   : > { %v4439_v2 = vpop.trf.xlu1  ;;  %v6230_v20 = vrot.slane %v6223_v8, %v8920_v25 }
 0x286   : > { %v10053_v31 = vpop.permute.xlu0 %7624  ;;  %v7243_v32 = vrot.slane %v8421_v58, %v8920_v25  ;;  %v8420_v46 = vcombine.low %v6187_v39, %v6194_v44  ;;  %v8422_v33 = vcombine.high %v6187_v39, %v6194_v44  ;;  %v10841_v39 = vld [vmem:[#allocation8_spill] sm:$0xff]  ;;  %v10842_v44 = vld [vmem:[#allocation23_spill] sm:$0xff] }
 0x287   : > { %7636 = vrot.lane.b32.xlu1 %v9640_v10, %s8737_s23  ;;  %v10071_v10 = vrot.slane %v7183_v61, %v8924_v30  ;;  %v6199_v61 = vcombine.low %v10033_v15, %v4439_v2 }
 0x288   : > { %7856 = vrot.lane.b32.xlu0 %v10049_v43, %s8733_s18  ;;  %s8740_s18 = smov 52   ;;  %v7234_v58 = vrot.slane %v8420_v46, %v8920_v25 }
 0x289   : > { %v10062_v49 = vpop.trf.xlu1  ;;  %v6206_v15 = vrot.slane %v6199_v61, %v8920_v25  ;;  %v7250_v61 = vrot.slane %v8422_v33, %v8920_v25 }
 0x28a   : > { %v10075_v53 = vpop.permute.xlu0 %7632 }
 0x28b   : > { %7644 = vrot.lane.b32.xlu1 %v9654_v50, %s8738_s17  ;;  %v7166_v50 = vrot.slane %v8416_v57, %v8920_v25  ;;  %v6232_v59 = vcombine.high %v6206_v15, %v6214_v36 }
 0x28c   : > { %7864 = vrot.lane.b32.xlu0 %v10060_v9, %s8734_s22  ;;  %s8739_s22 = smov 48  }
 0x28d   : > { %v4567_v51 = vpop.trf.xlu1  ;;  %v7199_v57 = vcombine.low %v7166_v50, %v7182_v16  ;;  %v7200_v27 = vcombine.high %v7166_v50, %v7182_v16  ;;  %v6231_v16 = vcombine.low %v6206_v15, %v6214_v36 }
 0x28e   : > { %v6215_v6 = vcombine.low %v10062_v49, %v4567_v51  ;;  %v6246_v49 = vrot.slane %v6232_v59, %v8924_v30 }
 0x28f   : > { %7652 = vrot.lane.b32.xlu1 %v9673_v4, %s8739_s22  ;;  %v10091_v4 = vpop.permute.xlu0 %7640  ;;  %v10100_v2 = vrot.slane %v7199_v57, %v8924_v30  ;;  %v10111_v37 = vrot.slane %v7200_v27, %v8924_v30  ;;  %v6239_v57 = vrot.slane %v6231_v16, %v8924_v30  ;;  %v6275_v27 = vcombine.low %v10842_v44, %v10841_v39 }
 0x290   : > { %7872 = vrot.lane.b32.xlu0 %v10071_v10, %s8735_s25  ;;  %s8741_s25 = smov 56   ;;  %v6222_v51 = vrot.slane %v6215_v6, %v8920_v25  ;;  %v7268_v6 = vcombine.high %v7234_v58, %v7250_v61 }
 0x291   : > { %v4631_v45 = vpop.trf.xlu1  ;;  %v8423_v46 = vcombine.low %v6239_v57, %v6246_v49  ;;  %v8425_v33 = vcombine.high %v6239_v57, %v6246_v49 }
 0x292   : > { %v6247_v16 = vcombine.low %v6222_v51, %v6230_v20  ;;  %v6248_v59 = vcombine.high %v6222_v51, %v6230_v20  ;;  %v10166_v44 = vrot.slane %v7268_v6, %v8924_v30 }
 0x293   : > { %7660 = vrot.lane.b32.xlu1 %v9687_v26, %s8740_s18  ;;  %v7227_v26 = vrot.slane %v8419_v5, %v8920_v25  ;;  %v10115_v63 = vpop.permute.xlu0 %7648  ;;  %v7311_v49 = vrot.slane %v8425_v33, %v8920_v25 }
 0x294   : > { %7880 = vrot.lane.b32.xlu0 %v10086_v19, %s8736_s3  ;;  %s8742_s3 = smov 60   ;;  %v6262_v20 = vrot.slane %v6248_v59, %v8924_v30 }
 0x295   : > { %v4695_v41 = vpop.trf.xlu1  ;;  %v7252_v1 = vcombine.high %v7227_v26, %v7243_v32 }
 0x296   : > { %v6267_v15 = vcombine.low %v4631_v45, %v4695_v41 }
 0x297   : > { %7668 = vrot.lane.b32.xlu1 %v9702_v11, %s8741_s25  ;;  %v7251_v11 = vcombine.low %v7227_v26, %v7243_v32  ;;  %v10140_v26 = vrot.slane %v7252_v1, %v8924_v30  ;;  %v7267_v32 = vcombine.low %v7234_v58, %v7250_v61  ;;  %v6255_v1 = vrot.slane %v6247_v16, %v8924_v30  ;;  %v10843_v58 = vld [vmem:[#allocation10_spill] sm:$0xff] }
 0x298   : > { %7888 = vrot.lane.b32.xlu0 %v10100_v2, %s8737_s23  ;;  %s8743_s23 = smov 64   ;;  %v6274_v45 = vrot.slane %v6267_v15, %v8920_v25  ;;  %v6291_v61 = vcombine.low %v10843_v58, %v9761_v47  ;;  %v10845_v58 = vld [vmem:[#allocation15_spill] sm:$0xff] }
 0x299   : > { %v10113_v50 = vpop.trf.xlu1  ;;  %v10129_v36 = vrot.slane %v7251_v11, %v8924_v30  ;;  %v10151_v41 = vrot.slane %v7267_v32, %v8924_v30  ;;  %v8424_v15 = vcombine.low %v6255_v1, %v6262_v20  ;;  %v8426_v32 = vcombine.high %v6255_v1, %v6262_v20 }
 0x29a   : > { %v6298_v47 = vrot.slane %v6291_v61, %v8920_v25  ;;  %v10846_v61 = vld [vmem:[#allocation9_spill] sm:$0xff] }
 0x29b   : > { %7676 = vrot.lane.b32.xlu1 %v9711_v48, %s8742_s3  ;;  %v10133_v48 = vpop.permute.xlu0 %7656  ;;  %v7318_v1 = vrot.slane %v8426_v32, %v8920_v25 }
 0x29c   : > { %7896 = vrot.lane.b32.xlu0 %v10111_v37, %s8738_s17  ;;  %s8744_s17 = smov 68  }
 0x29d   : > { %v4823_v5 = vpop.trf.xlu1 }
 0x29f   : > { %7684 = vrot.lane.b32.xlu1 %v9726_v17, %s8743_s23  ;;  %v6282_v17 = vrot.slane %v6275_v27, %v8920_v25  ;;  %v10155_v57 = vpop.permute.xlu0 %7664 }
 0x2a0   : > { %7904 = vrot.lane.b32.xlu0 %v10129_v36, %s8739_s22  ;;  %s8745_s22 = smov 72  }
 0x2a1   : > { %v10142_v8 = vpop.trf.xlu1  ;;  %v6299_v51 = vcombine.low %v6274_v45, %v6282_v17  ;;  %v6300_v39 = vcombine.high %v6274_v45, %v6282_v17 }
 0x2a3   : > { %7692 = vrot.lane.b32.xlu1 %v9741_v13, %s8744_s17  ;;  %v7295_v13 = vrot.slane %v8423_v46, %v8920_v25  ;;  %v6283_v46 = vcombine.low %v10113_v50, %v4823_v5  ;;  %v10171_v16 = vpop.permute.xlu0 %7672  ;;  %v6307_v59 = vrot.slane %v6299_v51, %v8924_v30  ;;  %v6314_v17 = vrot.slane %v6300_v39, %v8924_v30 }
 0x2a4   : > { %7912 = vrot.lane.b32.xlu0 %v10140_v26, %s8740_s18  ;;  %s8746_s18 = smov 76   ;;  %v7302_v5 = vrot.slane %v8424_v15, %v8920_v25 }
 0x2a5   : > { %v4951_v11 = vpop.trf.xlu1  ;;  %v7319_v33 = vcombine.low %v7295_v13, %v7311_v49  ;;  %v7320_v45 = vcombine.high %v7295_v13, %v7311_v49  ;;  %v6290_v6 = vrot.slane %v6283_v46, %v8920_v25  ;;  %v6343_v13 = vcombine.low %v10846_v61, %v10845_v58 }
 0x2a6   : > { %v8427_v49 = vcombine.low %v6307_v59, %v6314_v17  ;;  %v8429_v51 = vcombine.high %v6307_v59, %v6314_v17  ;;  %v7336_v17 = vcombine.high %v7302_v5, %v7318_v1 }
 0x2a7   : > { %7700 = vrot.lane.b32.xlu1 %v9754_v62, %s8745_s22  ;;  %v10844_v62 = vld [vmem:[#allocation11_spill] sm:$0xff]  ;;  %v10180_v50 = vrot.slane %v7319_v33, %v8924_v30  ;;  %v10191_v39 = vrot.slane %v7320_v45, %v8924_v30  ;;  %v10193_v46 = vpop.permute.xlu0 %7680  ;;  %v6315_v15 = vcombine.low %v6290_v6, %v6298_v47  ;;  %v6316_v32 = vcombine.high %v6290_v6, %v6298_v47 }
 0x2a8   : > { %7920 = vrot.lane.b32.xlu0 %v10151_v41, %s8741_s25  ;;  %s8747_s25 = smov 80   ;;  %v6335_v33 = vcombine.low %v10142_v8, %v4951_v11  ;;  %v6350_v58 = vrot.slane %v6343_v13, %v8920_v25  ;;  %v7363_v45 = vrot.slane %v8427_v49, %v8920_v25  ;;  %v7379_v61 = vrot.slane %v8429_v51, %v8920_v25 }
 0x2a9   : > { %v5015_v27 = vpop.trf.xlu1  ;;  %v6323_v47 = vrot.slane %v6315_v15, %v8924_v30  ;;  %v6330_v8 = vrot.slane %v6316_v32, %v8924_v30  ;;  %v10218_v49 = vrot.slane %v7336_v17, %v8924_v30 }
 0x2aa   : > { %v6342_v11 = vrot.slane %v6335_v33, %v8920_v25  ;;  %v7387_v51 = vcombine.low %v7363_v45, %v7379_v61 }
 0x2ab   : > { %7708 = vrot.lane.b32.xlu1 %v10844_v62, %s8746_s18  ;;  %v7335_v62 = vcombine.low %v7302_v5, %v7318_v1  ;;  %v10211_v13 = vpop.permute.xlu0 %7688  ;;  %v6359_v5 = vcombine.low %v9830_v42, %v9847_v29  ;;  %10848 = vst [vmem:[#allocation18_spill] sm:$0xff] %v10218_v49  ;;  %v8428_v15 = vcombine.low %v6323_v47, %v6330_v8 }
 0x2ac   : > { %7928 = vrot.lane.b32.xlu0 %v10166_v44, %s8742_s3  ;;  %s8748_s3 = smov 84   ;;  %v8430_v32 = vcombine.high %v6323_v47, %v6330_v8  ;;  %v6367_v33 = vcombine.low %v6342_v11, %v6350_v58  ;;  %v10227_v29 = vrot.slane %v7387_v51, %v8924_v30  ;;  %v10849_v8 = vld [vmem:[#allocation14_spill] sm:$0xff] }
 0x2ad   : > { %v5079_v20 = vpop.trf.xlu1  ;;  %v10207_v6 = vrot.slane %v7335_v62, %v8924_v30  ;;  %v6368_v62 = vcombine.high %v6342_v11, %v6350_v58  ;;  %v10850_v11 = vld [vmem:[#allocation27_spill] sm:$0xff] }
 0x2ae   : > { %v6351_v1 = vcombine.low %v5015_v27, %v5079_v20  ;;  %v7388_v27 = vcombine.high %v7363_v45, %v7379_v61  ;;  %v6375_v58 = vrot.slane %v6367_v33, %v8924_v30  ;;  %v7386_v47 = vrot.slane %v8430_v32, %v8920_v25 }
 0x2af   : > { %7716 = vrot.lane.b32.xlu1 %v9787_v0, %s8747_s25  ;;  %v10847_v0 = vld [vmem:[#allocation12_spill] sm:$0xff]  ;;  %v10229_v20 = vpop.permute.xlu0 %7696  ;;  %v6382_v17 = vrot.slane %v6368_v62, %v8924_v30  ;;  %v6411_v45 = vcombine.low %v10850_v11, %v9897_v52  ;;  %v10853_v11 = vld [vmem:[#allocation26_spill] sm:$0xff] }
 0x2b0   : > { %7936 = vrot.lane.b32.xlu0 %v10180_v50, %s8743_s23  ;;  %s8749_s23 = smov 88   ;;  %v6358_v42 = vrot.slane %v6351_v1, %v8920_v25  ;;  %v10242_v51 = vrot.slane %v7388_v27, %v8924_v30 }
 0x2b1   : > { %v5143_v59 = vpop.trf.xlu1  ;;  %v8431_v33 = vcombine.low %v6375_v58, %v6382_v17  ;;  %v6418_v52 = vrot.slane %v6411_v45, %v8920_v25 }
 0x2b3   : > { %7724 = vrot.lane.b32.xlu1 %v10847_v0, %s8748_s3  ;;  %v6366_v0 = vrot.slane %v6359_v5, %v8920_v25 }
 0x2b4   : > { %7944 = vrot.lane.b32.xlu0 %v10191_v39, %s8744_s17  ;;  %s8750_s17 = smov 92  }
 0x2b5   : > { %v6383_v61 = vcombine.low %v6358_v42, %v6366_v0  ;;  %v6384_v5 = vcombine.high %v6358_v42, %v6366_v0 }
 0x2b7   : > { %7732 = vrot.lane.b32.xlu1 %v9815_v23, %s8749_s23  ;;  %v5207_v23 = vpop.trf.xlu1  ;;  %v6391_v0 = vrot.slane %v6383_v61, %v8924_v30  ;;  %v6398_v42 = vrot.slane %v6384_v5, %v8924_v30 }
 0x2b8   : > { %7952 = vrot.lane.b32.xlu0 %v10207_v6, %s8745_s22  ;;  %s8751_s22 = smov 96   ;;  %v6403_v62 = vcombine.low %v5143_v59, %v5207_v23  ;;  %v7431_v23 = vrot.slane %v8431_v33, %v8920_v25 }
 0x2b9   : > { %v8434_v45 = vcombine.high %v6391_v0, %v6398_v42 }
 0x2bb   : > { %7740 = vrot.lane.b32.xlu1 %v9822_v54, %s8750_s17  ;;  %v7370_v54 = vrot.slane %v8428_v15, %v8920_v25  ;;  %v5271_v1 = vpop.trf.xlu1  ;;  %v8433_v15 = vcombine.high %v6375_v58, %v6382_v17  ;;  %v6410_v58 = vrot.slane %v6403_v62, %v8920_v25 }
 0x2bc   : > { %7960 = vrot.lane.b32.xlu0 %v10218_v49, %s8746_s18  ;;  %s8752_s18 = smov 100   ;;  %v10851_v49 = vld [vmem:[#allocation24_spill] sm:$0xff] }
 0x2bd   : > { %v7403_v32 = vcombine.low %v7370_v54, %v7386_v47  ;;  %v7404_v27 = vcombine.high %v7370_v54, %v7386_v47  ;;  %v6427_v54 = vcombine.low %v9923_v3, %v9942_v28  ;;  %v8432_v47 = vcombine.low %v6391_v0, %v6398_v42 }
 0x2be   : > { %v6435_v33 = vcombine.low %v6410_v58, %v6418_v52 }
 0x2bf   : > { %7748 = vrot.lane.b32.xlu1 %v10849_v8, %s8751_s22  ;;  %v10246_v8 = vpop.permute.xlu0 %7704  ;;  %v10255_v59 = vrot.slane %v7403_v32, %v8924_v30  ;;  %v5335_v17 = vpop.trf.xlu1  ;;  %v10266_v61 = vrot.slane %v7404_v27, %v8924_v30  ;;  %v6434_v3 = vrot.slane %v6427_v54, %v8920_v25  ;;  %v7438_v42 = vrot.slane %v8432_v47, %v8920_v25 }
 0x2c0   : > { %7968 = vrot.lane.b32.xlu0 %v10227_v29, %s8747_s25  ;;  %s8753_s25 = smov 104   ;;  %v6419_v62 = vcombine.low %v5271_v1, %v5335_v17  ;;  %v7454_v27 = vrot.slane %v8434_v45, %v8920_v25 }
 0x2c1   : > { %10852 = vst [vmem:[#allocation21_spill] sm:$0xff] %v10255_v59 }
 0x2c2   : > { %v7471_v54 = vcombine.low %v7438_v42, %v7454_v27 }
 0x2c3   : > { %7756 = vrot.lane.b32.xlu1 %v10851_v49, %s8752_s18  ;;  %v7447_v49 = vrot.slane %v8433_v15, %v8920_v25  ;;  %v10268_v5 = vpop.permute.xlu0 %7712  ;;  %v6436_v15 = vcombine.high %v6410_v58, %v6418_v52  ;;  %v6426_v52 = vrot.slane %v6419_v62, %v8920_v25 }
 0x2c4   : > { %7976 = vrot.lane.b32.xlu0 %v10242_v51, %s8748_s3  ;;  %s8754_s3 = smov 108   ;;  %v10297_v62 = vrot.slane %v7471_v54, %v8924_v30  ;;  %v10859_v54 = vld [vmem:[#allocation13_spill] sm:$0xff] }
 0x2c5   : > { %v7455_v32 = vcombine.low %v7431_v23, %v7447_v49  ;;  %v7456_v0 = vcombine.high %v7431_v23, %v7447_v49  ;;  %v6450_v1 = vrot.slane %v6436_v15, %v8924_v30  ;;  %v6452_v15 = vcombine.high %v6426_v52, %v6434_v3 }
 0x2c6   : > { %10857 = vst [vmem:[#allocation8_spill] sm:$0xff] %v10297_v62 }
 0x2c7   : > { %7764 = vrot.lane.b32.xlu1 %v10853_v11, %s8753_s25  ;;  %v10854_v11 = vld [vmem:[#allocation17_spill] sm:$0xff]  ;;  %v10281_v58 = vrot.slane %v7455_v32, %v8924_v30  ;;  %v10285_v17 = vpop.permute.xlu0 %7720  ;;  %v10290_v49 = vrot.slane %v7456_v0, %v8924_v30  ;;  %v7472_v32 = vcombine.high %v7438_v42, %v7454_v27 }
 0x2c8   : > { %7984 = vrot.lane.b32.xlu0 %v10255_v59, %s8749_s23  ;;  %v6443_v59 = vrot.slane %v6435_v33, %v8924_v30  ;;  %s8755_s23 = smov 112   ;;  %v6451_v33 = vcombine.low %v6426_v52, %v6434_v3 }
 0x2c9   : > { %10855 = vst [vmem:[#allocation22_spill] sm:$0xff] %v10281_v58  ;;  %10856 = vst [vmem:[#allocation20_spill] sm:$0xff] %v10290_v49  ;;  %v10312_v27 = vrot.slane %v7472_v32, %v8924_v30 }
 0x2ca   : > { %v8435_v47 = vcombine.low %v6443_v59, %v6450_v1  ;;  %v8437_v45 = vcombine.high %v6443_v59, %v6450_v1  ;;  %v6459_v0 = vrot.slane %v6451_v33, %v8924_v30  ;;  %v6466_v59 = vrot.slane %v6452_v15, %v8924_v30  ;;  %v10861_v15 = vld [vmem:[#allocation19_spill] sm:$0xff] }
 0x2cb   : > { %7772 = vrot.lane.b32.xlu1 %v10854_v11, %s8754_s3  ;;  %v10299_v11 = vpop.permute.xlu0 %7728 }
 0x2cc   : > { %7992 = vrot.lane.b32.xlu0 %v10266_v61, %s8750_s17  ;;  %s8756_s17 = smov 116   ;;  %v7499_v3 = vrot.slane %v8435_v47, %v8920_v25  ;;  %v7515_v1 = vrot.slane %v8437_v45, %v8920_v25  ;;  %v10860_v47 = vcombine.low %v9850_v7, %v10859_v54  ;;  %v8438_v33 = vcombine.high %v6459_v0, %v6466_v59 }
 0x2cd   : > { %v7561_v28 = vpop.permute.xlu1 %7560 }
 0x2ce   : > { %v10318_v45 = vrot.slane %v10860_v47, %v8924_v30 }
 0x2cf   : > { %7780 = vrot.lane.b32.xlu1 %v9908_v18, %s8755_s23  ;;  %v10325_v32 = vpop.permute.xlu0 %7736 }
 0x2d0   : > { %8000 = vrot.lane.b32.xlu0 %v10281_v58, %s8751_s22  ;;  %s8757_s22 = smov 120  }
 0x2d1   : > { %v7569_v23 = vpop.permute.xlu1 %7568 }
 0x2d3   : > { %7788 = vrot.lane.b32.xlu1 %v9926_v55, %s8756_s17  ;;  %v10858_v55 = vld [vmem:[#allocation25_spill] sm:$0xff] }
 0x2d4   : > { %8008 = vrot.lane.b32.xlu0 %v10290_v49, %s8752_s18  ;;  %v8064_v52 = vsel %vm8063_vm0, %v10858_v55, %v7561_v28  ;;  %v8436_v28 = vcombine.low %v6459_v0, %v6466_v59  ;;  %v7523_v55 = vcombine.low %v7499_v3, %v7515_v1  ;;  %s8758_s18 = smov 124   ;;  %v10862_v49 = vld [vmem:[#allocation16_spill] sm:$0xff]  ;;  %v10863_v59 = vmov 0.0  }
 0x2d5   : > { %v7573_v18 = vpop.permute.xlu1 %7572 }
 0x2d6   : > { %v7506_v47 = vrot.slane %v8436_v28, %v8920_v25 }
 0x2d7   : > { %7796 = vrot.lane.b32.xlu1 %v9938_v60, %s8757_s22  ;;  %v8066_v60 = vsel %vm8065_vm1, %v8064_v52, %v10861_v15  ;;  %v7079_v52 = vcombine.high %v10318_v45, %v10863_v59 }
 0x2d8   : > { %8016 = vrot.lane.b32.xlu0 %v10297_v62, %s8753_s25  ;;  %v8068_v62 = vsel %vm8067_vm2, %v8066_v60, %v7569_v23  ;;  %v7524_v23 = vcombine.high %v7499_v3, %v7515_v1  ;;  %v7080_v3 = vcombine.high %v9976_v40, %v10863_v59  ;;  %v10346_v1 = vpop.permute.xlu0 %7744  ;;  %v7081_v40 = vcombine.high %v9989_v24, %v10863_v59  ;;  %s10879_s25 = smov 98  }
 0x2d9   : > { %v7577_v42 = vpop.permute.xlu1 %7576  ;;  %v8070_v58 = vsel %vm8069_vm3, %v8068_v62, %v7573_v18  ;;  %v7522_v18 = vrot.slane %v8438_v33, %v8920_v25  ;;  %v7082_v24 = vcombine.high %v10004_v56, %v10863_v59 }
 0x2da   : > { %v8072_v7 = vsel %vm8071_vm4, %v8070_v58, %v7577_v42  ;;  %v10350_v28 = vrot.slane %v7524_v23, %v8924_v30 }
 0x2db   : > { %7804 = vrot.lane.b32.xlu1 %v10862_v49, %s8758_s18  ;;  %v10335_v49 = vrot.slane %v7523_v55, %v8924_v30  ;;  %v7539_v25 = vcombine.low %v7506_v47, %v7522_v18  ;;  %v7540_v55 = vcombine.high %v7506_v47, %v7522_v18 }
 0x2dc   : > { %8024 = vrot.lane.b32.xlu0 %v10312_v27, %s8754_s3  ;;  %s10881_s3 = smov 102  }
 0x2dd   : > { %v7581_v0 = vpop.permute.xlu1 %7580  ;;  %v10361_v60 = vrot.slane %v7539_v25, %v8924_v30  ;;  %v10374_v23 = vrot.slane %v7540_v55, %v8924_v30  ;;  %v7149_v25 = vcombine.high %v10049_v43, %v10863_v59  ;;  %v7215_v55 = vcombine.high %v10071_v10, %v10863_v59 }
 0x2de   : > { %v8074_v54 = vsel %vm8073_vm5, %v8072_v7, %v7581_v0  ;;  %v10364_v7 = vpop.permute.xlu0 %7752 }
 0x2df   : > { %7812 = vrot.lane.b32.xlu1 %v7079_v52, %s8720_s28  ;;  %v8076_v62 = vsel %vm8075_vm6, %v8074_v54, %v9980_v22  ;;  %s10864_s28 = smov 50  }
 0x2e0   : > { %8032 = vrot.lane.b32.xlu0 %v10335_v49, %s8755_s23  ;;  %s10883_s23 = smov 106  }
 0x2e1   : > { %v7589_v58 = vpop.permute.xlu1 %7588 }
 0x2e2   : > { %v8078_v42 = vsel %vm8077_vm7, %v8076_v62, %v7589_v58  ;;  %v10383_v56 = vpop.permute.xlu0 %7760  ;;  %v7148_v62 = vcombine.high %v10031_v34, %v10863_v59 }
 0x2e3   : > { %7820 = vrot.lane.b32.xlu1 %v7080_v3, %s8722_s4  ;;  %v8080_v22 = vsel %vm8079_vm8, %v8078_v42, %v9993_v12  ;;  %s10877_s4 = smov 94  }
 0x2e4   : > { %8040 = vrot.lane.b32.xlu0 %v10350_v28, %s8756_s17  ;;  %s10884_s17 = smov 110  }
 0x2e5   : > { %v7597_v33 = vpop.permute.xlu1 %7596 }
 0x2e6   : > { %v8082_v15 = vsel %vm8081_vm9, %v8080_v22, %v7597_v33  ;;  %v7150_v22 = vcombine.high %v10060_v9, %v10863_v59 }
 0x2e7   : > { %7828 = vrot.lane.b32.xlu1 %v7081_v40, %s8726_s24  ;;  %v8084_v12 = vsel %vm8083_vm10, %v8082_v15, %v10007_v21  ;;  %v7147_v21 = vcombine.high %v10020_v14, %v10863_v59  ;;  %v10393_v14 = vpop.permute.xlu0 %7768  ;;  %s10876_s24 = smov 90  }
 0x2e8   : > { %8048 = vrot.lane.b32.xlu0 %v10361_v60, %s8757_s22  ;;  %s10885_s22 = smov 114  }
 0x2e9   : > { %v7605_v0 = vpop.permute.xlu1 %7604 }
 0x2ea   : > { %v8086_v52 = vsel %vm10739_vm11, %v8084_v12, %v7605_v0  ;;  %vm10745_vm11 = vcmask 293888  }
 0x2eb   : > { %7836 = vrot.lane.b32.xlu1 %v7082_v24, %s8697_s27  ;;  %v8088_v47 = vsel %vm10738_vm12, %v8086_v52, %v10017_v35  ;;  %vm10742_vm12 = vcmask 277504   ;;  %v10405_v40 = vpop.permute.xlu0 %7776  ;;  %v7216_v24 = vcombine.high %v10086_v19, %v10863_v59  ;;  %s10865_s27 = smov 54  }
 0x2ec   : > { %8056 = vrot.lane.b32.xlu0 %v10374_v23, %s8758_s18  ;;  %s10886_s18 = smov 118  }
 0x2ed   : > { %v7613_v54 = vpop.permute.xlu1 %7612 }
 0x2ee   : > { %v8090_v18 = vsel %vm10741_vm13, %v8088_v47, %v7613_v54  ;;  %vm10747_vm13 = vcmask 326656   ;;  %v7217_v54 = vcombine.high %v10100_v2, %v10863_v59 }
 0x2ef   : > { %7844 = vrot.lane.b32.xlu1 %v7147_v21, %s8698_s29  ;;  %v8092_v58 = vsel %vm10740_vm14, %v8090_v18, %v10036_v38  ;;  %vm10744_vm14 = vcmask 310272   ;;  %v10415_v9 = vpop.permute.xlu0 %7784  ;;  %v7218_v18 = vcombine.high %v10111_v37, %v10863_v59  ;;  %s10866_s29 = smov 58  }
 0x2f1   : > { %v7621_v30 = vpop.permute.xlu1 %7620 }
 0x2f2   : > { %v8094_v35 = vsel %vm10743_vm15, %v8092_v58, %v7621_v30  ;;  %vm10749_vm15 = vcmask 359424  }
 0x2f3   : > { %7852 = vrot.lane.b32.xlu1 %v7148_v62, %s8699_s30  ;;  %v8096_v42 = vsel %vm10742_vm12, %v8094_v35, %v10053_v31  ;;  %vm10746_vm12 = vcmask 343040   ;;  %v10427_v47 = vpop.permute.xlu0 %7792  ;;  %v7283_v62 = vcombine.high %v10129_v36, %v10863_v59  ;;  %s10867_s30 = smov 62  }
 0x2f5   : > { %v7629_v3 = vpop.permute.xlu1 %7628 }
 0x2f6   : > { %v8098_v38 = vsel %vm10745_vm11, %v8096_v42, %v7629_v3  ;;  %vm10751_vm11 = vcmask 392192   ;;  %v7284_v3 = vcombine.high %v10140_v26, %v10863_v59 }
 0x2f7   : > { %7860 = vrot.lane.b32.xlu1 %v7149_v25, %s8700_s2  ;;  %v8100_v33 = vsel %vm10744_vm14, %v8098_v38, %v10075_v53  ;;  %vm10748_vm14 = vcmask 375808   ;;  %v10437_v2 = vpop.permute.xlu0 %7800  ;;  %v7285_v38 = vcombine.high %v10151_v41, %v10863_v59  ;;  %s10868_s2 = smov 66  }
 0x2f9   : > { %v7637_v34 = vpop.permute.xlu1 %7636 }
 0x2fa   : > { %v8102_v31 = vsel %vm10747_vm13, %v8100_v33, %v7637_v34  ;;  %vm10753_vm13 = vcmask 424960  }
 0x2fb   : > { %7868 = vrot.lane.b32.xlu1 %v7150_v22, %s8701_s5  ;;  %v8104_v15 = vsel %vm10746_vm12, %v8102_v31, %v10091_v4  ;;  %vm10750_vm12 = vcmask 408576   ;;  %v10449_v42 = vpop.permute.xlu0 %7808  ;;  %v7286_v22 = vcombine.high %v10166_v44, %v10863_v59  ;;  %s10869_s5 = smov 70  }
 0x2fd   : > { %v7645_v43 = vpop.permute.xlu1 %7644 }
 0x2fe   : > { %v8106_v53 = vsel %vm10749_vm15, %v8104_v15, %v7645_v43  ;;  %vm10755_vm15 = vcmask 457728   ;;  %v7351_v43 = vcombine.high %v10180_v50, %v10863_v59 }
 0x2ff   : > { %7876 = vrot.lane.b32.xlu1 %v7215_v55, %s8702_s12  ;;  %v8108_v12 = vsel %vm10748_vm14, %v8106_v53, %v10115_v63  ;;  %vm10752_vm14 = vcmask 441344   ;;  %v10459_v26 = vpop.permute.xlu0 %7816  ;;  %v7352_v53 = vcombine.high %v10191_v39, %v10863_v59  ;;  %s10870_s12 = smov 74  }
 0x301   : > { %v7653_v0 = vpop.permute.xlu1 %7652 }
 0x302   : > { %v8110_v4 = vsel %vm10751_vm11, %v8108_v12, %v7653_v0  ;;  %vm10757_vm11 = vcmask 490496  }
 0x303   : > { %7884 = vrot.lane.b32.xlu1 %v7216_v24, %s8703_s13  ;;  %v8112_v52 = vsel %vm10750_vm12, %v8110_v4, %v10133_v48  ;;  %vm10754_vm12 = vcmask 474112   ;;  %v10471_v15 = vpop.permute.xlu0 %7824  ;;  %v7353_v24 = vcombine.high %v10207_v6, %v10863_v59  ;;  %s10872_s13 = smov 78  }
 0x305   : > { %v7661_v10 = vpop.permute.xlu1 %7660 }
 0x306   : > { %v8114_v63 = vsel %vm10753_vm13, %v8112_v52, %v7661_v10  ;;  %vm10759_vm13 = vcmask 523264   ;;  %v10871_v10 = vld [vmem:[#allocation18_spill] sm:$0xff] }
 0x307   : > { %7892 = vrot.lane.b32.xlu1 %v7217_v54, %s8704_s15  ;;  %v8116_v21 = vsel %vm10752_vm14, %v8114_v63, %v10155_v57  ;;  %vm10756_vm14 = vcmask 506880   ;;  %v10481_v50 = vpop.permute.xlu0 %7832  ;;  %v7354_v52 = vcombine.high %v10871_v10, %v10863_v59  ;;  %s10873_s15 = smov 82  }
 0x309   : > { %v7669_v19 = vpop.permute.xlu1 %7668 }
 0x30a   : > { %v8118_v48 = vsel %vm10755_vm15, %v8116_v21, %v7669_v19  ;;  %vm10761_vm15 = vcmask 556032   ;;  %v7419_v19 = vcombine.high %v10227_v29, %v10863_v59 }
 0x30b   : > { %7900 = vrot.lane.b32.xlu1 %v7218_v18, %s8705_s16  ;;  %v8120_v58 = vsel %vm10754_vm12, %v8118_v48, %v10171_v16  ;;  %vm10758_vm12 = vcmask 539648   ;;  %v10493_v54 = vpop.permute.xlu0 %7840  ;;  %s10874_s16 = smov 86  }
 0x30d   : > { %v7677_v30 = vpop.permute.xlu1 %7676 }
 0x30e   : > { %v8122_v57 = vsel %vm10757_vm11, %v8120_v58, %v7677_v30  ;;  %vm10763_vm11 = vcmask 588800   ;;  %v7420_v30 = vcombine.high %v10242_v51, %v10863_v59 }
 0x30f   : > { %7908 = vrot.lane.b32.xlu1 %v7283_v62, %s10864_s28  ;;  %v8124_v35 = vsel %vm10756_vm14, %v8122_v57, %v10193_v46  ;;  %vm10760_vm14 = vcmask 572416   ;;  %v10503_v21 = vpop.permute.xlu0 %7848  ;;  %v10875_v62 = vld [vmem:[#allocation21_spill] sm:$0xff]  ;;  %s10887_s28 = smov 122  }
 0x310   : > { %v7421_v57 = vcombine.high %v10875_v62, %v10863_v59 }
 0x311   : > { %v7685_v37 = vpop.permute.xlu1 %7684 }
 0x312   : > { %v8126_v16 = vsel %vm10759_vm13, %v8124_v35, %v7685_v37  ;;  %vm10765_vm13 = vcmask 621568  }
 0x313   : > { %7916 = vrot.lane.b32.xlu1 %v7284_v3, %s10865_s27  ;;  %v8128_v25 = vsel %vm10758_vm12, %v8126_v16, %v10211_v13  ;;  %vm10762_vm12 = vcmask 605184   ;;  %v10515_v37 = vpop.permute.xlu0 %7856  ;;  %v7422_v3 = vcombine.high %v10266_v61, %v10863_v59  ;;  %s10888_s27 = smov 126  }
 0x315   : > { %v7693_v36 = vpop.permute.xlu1 %7692 }
 0x316   : > { %v8130_v46 = vsel %vm10761_vm15, %v8128_v25, %v7693_v36  ;;  %vm10767_vm15 = vcmask 654336  }
 0x317   : > { %7924 = vrot.lane.b32.xlu1 %v7285_v38, %s10866_s29  ;;  %v8132_v33 = vsel %vm10760_vm14, %v8130_v46, %v10229_v20  ;;  %vm10764_vm14 = vcmask 637952   ;;  %v10525_v16 = vpop.permute.xlu0 %7864  ;;  %v10878_v38 = vld [vmem:[#allocation22_spill] sm:$0xff]  ;;  %s8445_s29 = sshll.u32 %s8680_s9, 7  ;;  %s8258_s9 = scalar_lea.sflag [#allocation4], %s8882_s26 }
 0x318   : > { %v7487_v46 = vcombine.high %v10878_v38, %v10863_v59 }
 0x319   : > { %v7701_v34 = vpop.permute.xlu1 %7700 }
 0x31a   : > { %v8134_v13 = vsel %vm10763_vm11, %v8132_v33, %v7701_v34  ;;  %vm10769_vm11 = vcmask 687104   ;;  %v10880_v33 = vld [vmem:[#allocation20_spill] sm:$0xff] }
 0x31b   : > { %7932 = vrot.lane.b32.xlu1 %v7286_v22, %s10867_s30  ;;  %v8136_v31 = vsel %vm10762_vm12, %v8134_v13, %v10246_v8  ;;  %vm10766_vm12 = vcmask 670720   ;;  %v7488_v22 = vcombine.high %v10880_v33, %v10863_v59  ;;  %v7873_v13 = vpop.permute.xlu0 %7872  ;;  %s10935_s30 = sshll.u32 %s8882_s26, 3 }
 0x31d   : > { %v7709_v41 = vpop.permute.xlu1 %7708 }
 0x31e   : > { %v8138_v20 = vsel %vm10765_vm13, %v8136_v31, %v7709_v41  ;;  %vm10771_vm13 = vcmask 719872  }
 0x31f   : > { %7940 = vrot.lane.b32.xlu1 %v7351_v43, %s10868_s2  ;;  %v8140_v55 = vsel %vm10764_vm14, %v8138_v20, %v10268_v5  ;;  %vm10768_vm14 = vcmask 703488   ;;  %v10882_v43 = vld [vmem:[#allocation8_spill] sm:$0xff]  ;;  %s163_s2 = scalar_lea.vmem [#allocation5], %s10935_s30 }
 0x320   : > { %v7489_v20 = vcombine.high %v10882_v43, %v10863_v59 }
 0x321   : > { %v7717_v44 = vpop.permute.xlu1 %7716 }
 0x322   : > { %v8142_v8 = vsel %vm10767_vm15, %v8140_v55, %v7717_v44  ;;  %vm10773_vm15 = vcmask 752640  }
 0x323   : > { %7948 = vrot.lane.b32.xlu1 %v7352_v53, %s10869_s5  ;;  %v8144_v12 = vsel %vm10766_vm12, %v8142_v8, %v10285_v17  ;;  %vm10770_vm12 = vcmask 736256   ;;  %v7490_v8 = vcombine.high %v10312_v27, %v10863_v59  ;;  %s8276_s5 = sshll.u32 %s163_s2, 4  ;;  %s10648_s5 = int_to_ptr.vmem [resolvable:$true] %s8276_s5 }
 0x325   : > { %v7725_v0 = vpop.permute.xlu1 %7724 }
 0x326   : > { %v8146_v5 = vsel %vm10769_vm11, %v8144_v12, %v7725_v0  ;;  %vm10775_vm11 = vcmask 785408  }
 0x327   : > { %7956 = vrot.lane.b32.xlu1 %v7353_v24, %s10870_s12  ;;  %v8148_v4 = vsel %vm10768_vm14, %v8146_v5, %v10299_v11  ;;  %vm10772_vm14 = vcmask 769024   ;;  %v7555_v24 = vcombine.high %v10335_v49, %v10863_v59 }
 0x329   : > { %v7733_v39 = vpop.permute.xlu1 %7732 }
 0x32a   : > { %v8150_v17 = vsel %vm10771_vm13, %v8148_v4, %v7733_v39  ;;  %vm10777_vm13 = vcmask 818176  }
 0x32b   : > { %7964 = vrot.lane.b32.xlu1 %v7354_v52, %s10872_s13  ;;  %v8152_v63 = vsel %vm10770_vm12, %v8150_v17, %v10325_v32  ;;  %vm10774_vm12 = vcmask 801792   ;;  %v7557_v52 = vcombine.high %v10361_v60, %v10863_v59 }
 0x32d   : > { %v7741_v6 = vpop.permute.xlu1 %7740 }
 0x32e   : > { %v8154_v11 = vsel %vm10773_vm15, %v8152_v63, %v7741_v6  ;;  %vm10779_vm15 = vcmask 850944  }
 0x32f   : > { %7972 = vrot.lane.b32.xlu1 %v7419_v19, %s10873_s15  ;;  %v8156_v48 = vsel %vm10772_vm14, %v8154_v11, %v10346_v1  ;;  %vm10776_vm14 = vcmask 834560   ;;  %s10646_s15 = scalar_lea.hbm %s10696_s1, %s8445_s29 }
 0x331   : > { %v7749_v18 = vpop.permute.xlu1 %7748 }
 0x332   : > { %v8158_v32 = vsel %vm10775_vm11, %v8156_v48, %v7749_v18  ;;  %vm10781_vm11 = vcmask 883712  }
 0x333   : > { %7980 = vrot.lane.b32.xlu1 %v7420_v30, %s10874_s16  ;;  %v8160_v58 = vsel %vm10774_vm12, %v8158_v32, %v10364_v7  ;;  %vm10778_vm12 = vcmask 867328   ;;  %s8606_s16 = scalar_lea.vmem %s10648_s5, 128 }
 0x334   : > { %p8607_p8 = scmp.ne.s32.totalorder %s10648_s5, %s8606_s16 }
 0x335   : > { %v7757_v29 = vpop.permute.xlu1 %7756 }
 0x336   : > { %v8162_v1 = vsel %vm10777_vm13, %v8160_v58, %v7757_v29  ;;  %vm10783_vm13 = vcmask 916480   ;;  %p8608_p11 = pnand %p8607_p8, %p10936_p9 }
 0x337   : > { %7988 = vrot.lane.b32.xlu1 %v7421_v57, %s10876_s24  ;;  %v8164_v35 = vsel %vm10776_vm14, %v8162_v1, %v10383_v56  ;;  %vm10780_vm14 = vcmask 900096   ;;  %s8759_s24 = smov [#allocation5]  }
 0x338   : > { %p8609_p0 = pneg %p8608_p11 }
 0x339   : > { %v7765_v51 = vpop.permute.xlu1 %7764 }
 0x33a   : > { %v8166_v7 = vsel %vm10779_vm15, %v8164_v35, %v7765_v51  ;;  %vm8177_vm15 = vcmask 949248  }
 0x33b   : > { %7996 = vrot.lane.b32.xlu1 %v7422_v3, %s10877_s4  ;;  %v8168_v25 = vsel %vm10778_vm12, %v8166_v7, %v10393_v14  ;;  %vm10782_vm12 = vcmask 932864   ;;  %s8610_s4 = sshll.u32 %s8759_s24, 4  ;;  %s8611_s4 = int_to_ptr.vmem [resolvable:$false] %s8610_s4 }
 0x33c   : > { %p8613_p6 = scmp.lt.s32.totalorder %s10648_s5, %s8611_s4 }
 0x33d   : > { %v7773_v36 = vpop.permute.xlu1 %7772 }
 0x33e   : > { %v8170_v56 = vsel %vm10781_vm11, %v8168_v25, %v7773_v36  ;;  %vm8181_vm11 = vcmask 982016  }
 0x33f   : > { %8004 = vrot.lane.b32.xlu1 %v7487_v46, %s10879_s25  ;;  %v8172_v34 = vsel %vm10780_vm14, %v8170_v56, %v10405_v40  ;;  %vm8179_vm14 = vcmask 965632   ;;  %v7881_v40 = vpop.permute.xlu0 %7880  ;;  %s8612_s25 = scalar_lea.vmem %s8611_s4, 256 }
 0x340   : > { %p8614_p13 = scmp.lt.s32.totalorder %s8612_s25, %s8606_s16 }
 0x341   : > { %v7781_v61 = vpop.permute.xlu1 %7780 }
 0x342   : > { %v8174_v41 = vsel %vm10783_vm13, %v8172_v34, %v7781_v61  ;;  %vm8185_vm13 = vcmask 1014784   ;;  %p8615_p2 = por %p8614_p13, %p8613_p6 }
 0x343   : > { %8012 = vrot.lane.b32.xlu1 %v7488_v22, %s10881_s3  ;;  %v8176_v31 = vsel %vm10782_vm12, %v8174_v41, %v10415_v9  ;;  %vm8183_vm12 = vcmask 998400   ;;  %v7889_v5 = vpop.permute.xlu0 %7888 }
 0x344   : > { %p8616_p5 = pnand %p8615_p2, %p8609_p0 }
 0x345   : > { %v7789_v14 = vpop.permute.xlu1 %7788 }
 0x346   : > { %v8178_v44 = vsel %vm8177_vm15, %v8176_v31, %v7789_v14 }
 0x347   : > { %8020 = vrot.lane.b32.xlu1 %v7489_v20, %s10883_s23  ;;  %v8180_v53 = vsel %vm8179_vm14, %v8178_v44, %v10427_v47  ;;  %v7556_v47 = vcombine.high %v10350_v28, %v10863_v59  ;;  %v7897_v10 = vpop.permute.xlu0 %7896 }
 0x349   : > { %v7797_v55 = vpop.permute.xlu1 %7796 }
 0x34a   : > { %v8182_v0 = vsel %vm8181_vm11, %v8180_v53, %v7797_v55 }
 0x34b   : > { %8028 = vrot.lane.b32.xlu1 %v7490_v8, %s10884_s17  ;;  %v8184_v12 = vsel %vm8183_vm12, %v8182_v0, %v10437_v2  ;;  %v7905_v63 = vpop.permute.xlu0 %7904 }
 0x34d   : > { %v7805_v9 = vpop.permute.xlu1 %7804 }
 0x34e   : > { %v10556_v39 = vsel %vm8185_vm13, %v8184_v12, %v7805_v9 }
 0x34f   : > { %8036 = vrot.lane.b32.xlu1 %v7555_v24, %s10885_s22  ;;  %v7913_v18 = vpop.permute.xlu0 %7912 }
 0x351   : > { %v7813_v27 = vpop.permute.xlu1 %7812 }
 0x352   : > { %v8189_v4 = vsel %vm8063_vm0, %v10318_v45, %v7813_v27  ;;  %v7558_v45 = vcombine.high %v10374_v23, %v10863_v59  ;;  %vm10889_vm0 = vcmask 195584  }
 0x353   : > { %8044 = vrot.lane.b32.xlu1 %v7556_v47, %s10886_s18  ;;  %v8190_v2 = vsel %vm8065_vm1, %v8189_v4, %v10459_v26  ;;  %v7921_v23 = vpop.permute.xlu0 %7920  ;;  %vm10890_vm1 = vcmask 211968  }
 0x355   : > { %v7821_v49 = vpop.permute.xlu1 %7820 }
 0x356   : > { %v8191_v17 = vsel %vm8067_vm2, %v8190_v2, %v7821_v49  ;;  %vm10891_vm2 = vcmask 228352  }
 0x357   : > { %8052 = vrot.lane.b32.xlu1 %v7557_v52, %s10887_s28  ;;  %v8192_v28 = vsel %vm8069_vm3, %v8191_v17, %v10471_v15  ;;  %v7929_v57 = vpop.permute.xlu0 %7928  ;;  %vm10892_vm3 = vcmask 244736  }
 0x359   : > { %v7829_v6 = vpop.permute.xlu1 %7828 }
 0x35a   : > { %v8193_v19 = vsel %vm8071_vm4, %v8192_v28, %v7829_v6  ;;  %vm10893_vm4 = vcmask 261120  }
 0x35b   : > { %8060 = vrot.lane.b32.xlu1 %v7558_v45, %s10888_s27  ;;  %v8194_v60 = vsel %vm8073_vm5, %v8193_v19, %v10481_v50  ;;  %vm10894_vm5 = vcmask 277504  }
 0x35d   : > { %v7837_v26 = vpop.permute.xlu1 %7836 }
 0x35e   : > { %v8195_v11 = vsel %vm8075_vm6, %v8194_v60, %v7837_v26  ;;  %vm10895_vm6 = vcmask 293888  }
 0x35f   : > { %v8196_v15 = vsel %vm8077_vm7, %v8195_v11, %v10493_v54  ;;  %vm10896_vm7 = vcmask 310272  }
 0x361   : > { %v7845_v48 = vpop.permute.xlu1 %7844 }
 0x362   : > { %v8197_v30 = vsel %vm8079_vm8, %v8196_v15, %v7845_v48  ;;  %vm10897_vm8 = vcmask 326656  }
 0x363   : > { %v8198_v59 = vsel %vm8081_vm9, %v8197_v30, %v10503_v21  ;;  %v7937_v21 = vpop.permute.xlu0 %7936  ;;  %vm10898_vm9 = vcmask 343040  }
 0x365   : > { %v7853_v32 = vpop.permute.xlu1 %7852 }
 0x366   : > { %v8199_v29 = vsel %vm8083_vm10, %v8198_v59, %v7853_v32  ;;  %vm10899_vm10 = vcmask 359424  }
 0x367   : > { %v8200_v50 = vsel %vm10889_vm0, %v8199_v29, %v10515_v37  ;;  %v7945_v38 = vpop.permute.xlu0 %7944  ;;  %vm10900_vm0 = vcmask 375808  }
 0x369   : > { %v7861_v58 = vpop.permute.xlu1 %7860 }
 0x36a   : > { %v8201_v62 = vsel %vm10890_vm1, %v8200_v50, %v7861_v58  ;;  %vm10901_vm1 = vcmask 392192  }
 0x36b   : > { %v8202_v54 = vsel %vm10891_vm2, %v8201_v62, %v10525_v16  ;;  %v7953_v33 = vpop.permute.xlu0 %7952  ;;  %vm10902_vm2 = vcmask 408576  }
 0x36d   : > { %v7869_v1 = vpop.permute.xlu1 %7868 }
 0x36e   : > { %v8203_v51 = vsel %vm10892_vm3, %v8202_v54, %v7869_v1  ;;  %vm10903_vm3 = vcmask 424960  }
 0x36f   : > { %v8204_v3 = vsel %vm10893_vm4, %v8203_v51, %v7873_v13  ;;  %v7961_v31 = vpop.permute.xlu0 %7960  ;;  %vm10904_vm4 = vcmask 441344  }
 0x371   : > { %v7877_v35 = vpop.permute.xlu1 %7876 }
 0x372   : > { %v8205_v7 = vsel %vm10894_vm5, %v8204_v3, %v7877_v35  ;;  %vm10905_vm5 = vcmask 457728  }
 0x373   : > { %v8206_v25 = vsel %vm10895_vm6, %v8205_v7, %v7881_v40  ;;  %v7969_v53 = vpop.permute.xlu0 %7968  ;;  %vm10906_vm6 = vcmask 474112  }
 0x375   : > { %v7885_v36 = vpop.permute.xlu1 %7884 }
 0x376   : > { %v8207_v37 = vsel %vm10896_vm7, %v8206_v25, %v7885_v36  ;;  %vm10907_vm7 = vcmask 490496  }
 0x377   : > { %v8208_v56 = vsel %vm10897_vm8, %v8207_v37, %v7889_v5  ;;  %vm10908_vm8 = vcmask 506880   ;;  %v7977_v24 = vpop.permute.xlu0 %7976 }
 0x379   : > { %v7893_v46 = vpop.permute.xlu1 %7892 }
 0x37a   : > { %v8209_v61 = vsel %vm10898_vm9, %v8208_v56, %v7893_v46  ;;  %vm10909_vm9 = vcmask 523264  }
 0x37b   : > { %v8210_v34 = vsel %vm10899_vm10, %v8209_v61, %v7897_v10  ;;  %vm10910_vm10 = vcmask 539648   ;;  %v7985_v2 = vpop.permute.xlu0 %7984 }
 0x37d   : > { %v7901_v16 = vpop.permute.xlu1 %7900 }
 0x37e   : > { %v8211_v22 = vsel %vm10900_vm0, %v8210_v34, %v7901_v16  ;;  %vm10911_vm0 = vcmask 556032  }
 0x37f   : > { %v8212_v41 = vsel %vm10901_vm1, %v8211_v22, %v7905_v63  ;;  %vm10912_vm1 = vcmask 572416   ;;  %v7993_v6 = vpop.permute.xlu0 %7992 }
 0x381   : > { %v7909_v13 = vpop.permute.xlu1 %7908 }
 0x382   : > { %v8213_v14 = vsel %vm10902_vm2, %v8212_v41, %v7909_v13  ;;  %vm10913_vm2 = vcmask 588800  }
 0x383   : > { %v8214_v20 = vsel %vm10903_vm3, %v8213_v14, %v7913_v18  ;;  %vm10914_vm3 = vcmask 605184   ;;  %v8001_v11 = vpop.permute.xlu0 %8000 }
 0x385   : > { %v7917_v43 = vpop.permute.xlu1 %7916 }
 0x386   : > { %v8215_v44 = vsel %vm10904_vm4, %v8214_v20, %v7917_v43  ;;  %vm10915_vm4 = vcmask 621568  }
 0x387   : > { %v8216_v55 = vsel %vm10905_vm5, %v8215_v44, %v7921_v23  ;;  %vm10916_vm5 = vcmask 637952   ;;  %v8009_v32 = vpop.permute.xlu0 %8008 }
 0x389   : > { %v7925_v40 = vpop.permute.xlu1 %7924 }
 0x38a   : > { %v8217_v8 = vsel %vm10906_vm6, %v8216_v55, %v7925_v40  ;;  %vm10917_vm6 = vcmask 654336  }
 0x38b   : > { %v8218_v9 = vsel %vm10907_vm7, %v8217_v8, %v7929_v57  ;;  %vm10918_vm7 = vcmask 670720   ;;  %v8017_v62 = vpop.permute.xlu0 %8016 }
 0x38d   : > { %v7933_v0 = vpop.permute.xlu1 %7932 }
 0x38e   : > { %v8219_v12 = vsel %vm10908_vm8, %v8218_v9, %v7933_v0  ;;  %vm10919_vm8 = vcmask 687104  }
 0x38f   : > { %v8220_v27 = vsel %vm10909_vm9, %v8219_v12, %v7937_v21  ;;  %vm10920_vm9 = vcmask 703488   ;;  %v8025_v35 = vpop.permute.xlu0 %8024 }
 0x391   : > { %v7941_v5 = vpop.permute.xlu1 %7940 }
 0x392   : > { %v8221_v47 = vsel %vm10910_vm10, %v8220_v27, %v7941_v5  ;;  %vm10921_vm10 = vcmask 719872  }
 0x393   : > { %v8222_v10 = vsel %vm10911_vm0, %v8221_v47, %v7945_v38  ;;  %vm10922_vm0 = vcmask 736256   ;;  %v8033_v37 = vpop.permute.xlu0 %8032 }
 0x395   : > { %v7949_v4 = vpop.permute.xlu1 %7948 }
 0x396   : > { %v8223_v49 = vsel %vm10912_vm1, %v8222_v10, %v7949_v4  ;;  %vm10923_vm1 = vcmask 752640  }
 0x397   : > { %v8224_v17 = vsel %vm10913_vm2, %v8223_v49, %v7953_v33  ;;  %vm10924_vm2 = vcmask 769024   ;;  %v8041_v16 = vpop.permute.xlu0 %8040 }
 0x399   : > { %v7957_v52 = vpop.permute.xlu1 %7956 }
 0x39a   : > { %v8225_v28 = vsel %vm10914_vm3, %v8224_v17, %v7957_v52  ;;  %vm10925_vm3 = vcmask 785408  }
 0x39b   : > { %v8226_v63 = vsel %vm10915_vm4, %v8225_v28, %v7961_v31  ;;  %vm10926_vm4 = vcmask 801792   ;;  %v8049_v14 = vpop.permute.xlu0 %8048 }
 0x39d   : > { %v7965_v45 = vpop.permute.xlu1 %7964 }
 0x39e   : > { %v8227_v19 = vsel %vm10916_vm5, %v8226_v63, %v7965_v45  ;;  %vm10927_vm5 = vcmask 818176  }
 0x39f   : > { %v8228_v60 = vsel %vm10917_vm6, %v8227_v19, %v7969_v53  ;;  %vm10928_vm6 = vcmask 834560   ;;  %v8057_v40 = vpop.permute.xlu0 %8056 }
 0x3a1   : > { %v7973_v26 = vpop.permute.xlu1 %7972 }
 0x3a2   : > { %v8229_v18 = vsel %vm10918_vm7, %v8228_v60, %v7973_v26  ;;  %vm10929_vm7 = vcmask 850944  }
 0x3a3   : > { %v8230_v15 = vsel %vm10919_vm8, %v8229_v18, %v7977_v24  ;;  %vm10930_vm8 = vcmask 867328  }
 0x3a5   : > { %v7981_v48 = vpop.permute.xlu1 %7980 }
 0x3a6   : > { %v8231_v30 = vsel %vm10920_vm9, %v8230_v15, %v7981_v48  ;;  %vm10931_vm9 = vcmask 883712  }
 0x3a7   : > { %v8232_v23 = vsel %vm10921_vm10, %v8231_v30, %v7985_v2  ;;  %vm10932_vm10 = vcmask 900096  }
 0x3a9   : > { %v7989_v59 = vpop.permute.xlu1 %7988 }
 0x3aa   : > { %v8233_v29 = vsel %vm10922_vm0, %v8232_v23, %v7989_v59  ;;  %vm10933_vm0 = vcmask 916480  }
 0x3ab   : > { %v8234_v50 = vsel %vm10923_vm1, %v8233_v29, %v7993_v6  ;;  %vm10934_vm1 = vcmask 932864  }
 0x3ad   : > { %v7997_v58 = vpop.permute.xlu1 %7996 }
 0x3ae   : > { %v8235_v57 = vsel %vm10924_vm2, %v8234_v50, %v7997_v58  ;;  %vm8187_vm2 = vcmask 1031168  }
 0x3af   : > { %v8236_v54 = vsel %vm10925_vm3, %v8235_v57, %v8001_v11  ;;  %v8188_v8 = vsel %vm8187_vm2, %v10556_v39, %v10449_v42 }
 0x3b1   : > { %v8005_v1 = vpop.permute.xlu1 %8004 }
 0x3b2   : > { %v8237_v51 = vsel %vm10926_vm4, %v8236_v54, %v8005_v1 }
 0x3b3   : > { %v8238_v21 = vsel %vm10927_vm5, %v8237_v51, %v8009_v32 }
 0x3b5   : > { %v8013_v3 = vpop.permute.xlu1 %8012 }
 0x3b6   : > { %v8239_v7 = vsel %vm10928_vm6, %v8238_v21, %v8013_v3 }
 0x3b7   : > { %v8240_v25 = vsel %vm10929_vm7, %v8239_v7, %v8017_v62 }
 0x3b9   : > { %v8021_v36 = vpop.permute.xlu1 %8020 }
 0x3ba   : > { %v8241_v38 = vsel %vm10930_vm8, %v8240_v25, %v8021_v36 }
 0x3bb   : > { %v8242_v56 = vsel %vm10931_vm9, %v8241_v38, %v8025_v35 }
 0x3bd   : > { %v8029_v46 = vpop.permute.xlu1 %8028 }
 0x3be   : > { %v8243_v61 = vsel %vm10932_vm10, %v8242_v56, %v8029_v46 }
 0x3bf   : > { %v8244_v33 = vsel %vm10933_vm0, %v8243_v61, %v8033_v37 }
 0x3c1   : > { %v8037_v34 = vpop.permute.xlu1 %8036 }
 0x3c2   : > { %v8245_v22 = vsel %vm10934_vm1, %v8244_v33, %v8037_v34 }
 0x3c3   : > { %v8246_v41 = vsel %vm8177_vm15, %v8245_v22, %v8041_v16 }
 0x3c5   : > { %v8045_v13 = vpop.permute.xlu1 %8044 }
 0x3c6   : > { %v8247_v31 = vsel %vm8179_vm14, %v8246_v41, %v8045_v13 }
 0x3c7   : > { %v8248_v20 = vsel %vm8181_vm11, %v8247_v31, %v8049_v14 }
 0x3c9   : > { %v8053_v43 = vpop.permute.xlu1 %8052 }
 0x3ca   : > { %v8249_v44 = vsel %vm8183_vm12, %v8248_v20, %v8053_v43 }
 0x3cb   : > { %v8250_v53 = vsel %vm8185_vm13, %v8249_v44, %v8057_v40 }
 0x3cd   : > { %v8061_v55 = vpop.permute.xlu1 %8060 }
 0x3ce   : > { %v8251_v0 = vsel %vm8187_vm2, %v8250_v53, %v8061_v55 }
 0x3cf   : > { %v8254_v9 = vcombine.low %v8188_v8, %v8251_v0 }
 0x3d1   : > { %8256 = vst [vmem:[%s163_s2] sm:$0xff] %v8254_v9 }
 0x3d2   : > { %8619 = shalt.err (!%p8616_p5)
}
 0x3d3   : > { %s8620_s26 = scalar_lea.hbm %s10646_s15, 128  ;;  %s8624_s17 = scalar_lea.hbm %s10696_s1, 256 }
 0x3d4   : > { %p8621_p4 = scmp.ne.s32.totalorder %s10646_s15, %s8620_s26  ;;  %p8625_p12 = scmp.lt.u32.totalorder %s10646_s15, %s10696_s1 }
 0x3d5   : > { %p8626_p1 = scmp.lt.u32.totalorder %s8624_s17, %s8620_s26  ;;  %p8628_p8 = scmp.lt.u32.totalorder %s8620_s26, %s10646_s15 }
 0x3d6   : > { %p8622_p7 = pnand %p8621_p4, %p10936_p9 }
 0x3d7   : > { %p8627_p3 = por %p8626_p1, %p8625_p12 }
 0x3d8   : > { %p8623_p10 = pneg %p8622_p7 }
 0x3d9   : > { %p8629_p11 = por %p8628_p8, %p8627_p3 }
 0x3db   : > { %p8630_p0 = pnand %p8629_p11, %p8623_p10 }
 0x3dd   : > { %8633 = shalt.err (!%p8630_p0)
}
 0x3de   : > { %8448 = dma.vmem_to_hbm [thread:$0]  (%p10936_p9), %s10648_s5, 128, %s10646_s15, %s8258_s9  }
 0x3df PF: > { %s8288_s28 = sand.u32 1, %s8668_s6   ;;  %p10937_p6 = scmp.ne.s32.totalorder %s10787_s21, 0 }
 0x3e0   : > { %p10938_p13 = scmp.ge.s32.totalorder %s8688_s11, 2  ;;  %s8289_s27 = scalar_lea.sflag [#allocation4], %s8288_s28 }
 0x3e2   : > { %p8455_p2 = pnand %p10938_p13, %p10937_p6 }
 0x3e4   : > { %8663 = dma.done.wait (!%p8455_p2), %s8289_s27, 128  }
 0x3e5   : > { %8665 = vsyncadd (!%p8455_p2), %s8289_s27, 4294967168  ;;  %s17_s11 = sadd.s32 1, %s8688_s11   ;;  %s10939_s6 = smov %s8672_s7 }
 0x3e6   : > { %p14_p5 = scmp.ge.s32.totalorder %s17_s11, 4   ;;  %s10940_s7 = smov %s8676_s8 }
 0x3e7   : > { %s10941_s8 = smov %s8826_s20  ;;  %s10942_s9 = smov %s8684_s10 }
 0x3e8   : > { %s10943_s10 = smov %s10945_s14  ;;  %16 = sbr.rel (!%p14_p5) target bundleno = 6 (0x6), region = 69 }
 0x3ef   :  { %8294 = vsyncpa [#allocation3], 1 }
 0x3f0   :  { %8296 = vsyncpa [#allocation3 + $0x1], 1 }
 0x3f1   :  { %8297 = vsyncpa [#allocation4], 1 }
 0x3f2   :  { %8299 = vsyncpa [#allocation4 + $0x1], 1 }

</bundles_post_ra>
